<compile_context>
chip_gen: v7x
topology: tpu7x:2x2x1
jax: 0.10.0
libtpu: 0.0.40
codegen_flags: <defaults>
</compile_context>

<pallas_src>
import jax
import jax.numpy as jnp
from jax.experimental import pallas as pl
from jax.experimental.pallas import tpu as pltpu


# ---------------------------------------------------------------------------
# Fused Pallas kernel
# ---------------------------------------------------------------------------

def _pamnet_kernel(a_hat_ref, g_src_ref, g_dst_ref, scat_ref, batch_ref,
                   x_ref, pos_ref,
                   w_proj_ref, b_gcn_ref, b_lin_ref,
                   w_p1_ref, b_p1_ref, w_p2_ref, b_p2_ref,
                   w_att_d_ref, w_att_s_ref, b_att_ref,
                   w_fus_g_ref, w_fus_l_ref, b_fus_ref,
                   w1_ref, b1_ref, w2_ref, b2_ref,
                   o_ref):
    f32 = jnp.float32
    h_pad = b_gcn_ref.shape[1]

    def dot(a, b):
        return jnp.dot(a, b, preferred_element_type=f32)

    x = x_ref[...]                                            # [N, C]

    # ---- shared input projection (GCN W and PAMConv lin W fused, one matmul) ----
    proj = dot(x, w_proj_ref[...])                            # [N, 2H]
    xw = proj[:, :h_pad]                                      # GCN:   x @ W_gcn
    xl = proj[:, h_pad:] + b_lin_ref[...]                     # PAMConv.lin(x)

    # ---- GCN branch: relu( A_hat @ (x @ W) + b ) -------------------------
    gfeat = jnp.maximum(dot(a_hat_ref[...], xw) + b_gcn_ref[...], 0.0)

    # ---- PAMConv branch (edge-wise via one-hot gather/scatter matmuls) ---
    g_src = g_src_ref[...]                                    # [E, N]
    g_dst = g_dst_ref[...]                                    # [E, N]
    xs = dot(g_src, xl)                                       # x_j per edge  [E, H]
    xd = dot(g_dst, xl)                                       # x_i per edge  [E, H]
    dpos = dot(g_dst - g_src, pos_ref[...])                   # pos_i - pos_j [E, P]

    demb = jnp.maximum(dot(dpos, w_p1_ref[...]) + b_p1_ref[...], 0.0)
    demb = dot(demb, w_p2_ref[...]) + b_p2_ref[...]           # [E, H]

    # attention logit, replicated across all lanes (weight column replicated)
    att_logit = dot(xd, w_att_d_ref[...]) + dot(xs, w_att_s_ref[...]) + b_att_ref[...]
    att = 1.0 / (1.0 + jnp.exp(-att_logit))                   # sigmoid (EUP), [E, H]
    msg = att * (xs + demb)                                   # [E, H]

    # scatter-add messages to destination nodes, then outer relu
    lfeat = jnp.maximum(dot(scat_ref[...], msg), 0.0)         # [N, H]

    # ---- fusion: relu( [gfeat, lfeat] @ W_fus + b ) (split-weight form) ---
    fused = jnp.maximum(
        dot(gfeat, w_fus_g_ref[...]) + dot(lfeat, w_fus_l_ref[...]) + b_fus_ref[...],
        0.0)                                                  # [N, H]

    # ---- global_mean_pool (in-kernel masked segment mean) ----------------
    g_pad = o_ref.shape[0]
    n_pad = fused.shape[0]
    gids = jax.lax.broadcasted_iota(jnp.int32, (g_pad, n_pad), 0)
    mask = (gids == batch_ref[...]).astype(f32)               # [G, N]
    counts = jnp.maximum(jnp.sum(mask, axis=1, keepdims=True), 1.0)
    pooled = dot(mask, fused) / counts                        # [G, H]

    # ---- head: relu(lin1) -> lin2 (lane-dense padded output) -------------
    h = jnp.maximum(dot(pooled, w1_ref[...]) + b1_ref[...], 0.0)
    o_ref[...] = dot(h, w2_ref[...]) + b2_ref[...]


# ---------------------------------------------------------------------------
# Padding / graph-structure glue (plain JAX)
# ---------------------------------------------------------------------------

def _ceil_to(v, m):
    return ((v + m - 1) // m) * m


def _pad2(a, rows, cols):
    out = jnp.zeros((rows, cols), a.dtype)
    return out.at[:a.shape[0], :a.shape[1]].set(a)


def build_graph_tensors(edge_index, batch, num_nodes, n_pad, e_pad):
    """Normalized GCN adjacency, one-hot gather/scatter matrices, padded batch ids."""
    src = edge_index[0]
    dst = edge_index[1]

    # GCN: A[dst, src] += 1, self-loops forced to exactly 1 (add_remaining_self_loops),
    # symmetric D^{-1/2} (A + I) D^{-1/2} with deg = in-degree incl. self-loop.
    a = jnp.zeros((num_nodes, num_nodes), jnp.float32).at[dst, src].add(1.0)
    eye = jnp.eye(num_nodes, dtype=jnp.float32)
    a = a * (1.0 - eye) + eye
    deg = a.sum(axis=1)
    dinv = deg ** -0.5
    a_hat = _pad2(dinv[:, None] * a * dinv[None, :], n_pad, n_pad)

    # one-hot gather matrices (rows = edges); padded edge rows are all-zero so their
    # (garbage-free) messages scatter nowhere.
    node_ids = jnp.arange(num_nodes)
    g_src = _pad2((src[:, None] == node_ids[None, :]).astype(jnp.float32), e_pad, n_pad)
    g_dst = _pad2((dst[:, None] == node_ids[None, :]).astype(jnp.float32), e_pad, n_pad)
    scat_dst = g_dst.T                                         # [N_pad, E_pad]

    batch_row = jnp.full((1, n_pad), -1, jnp.int32)
    batch_row = batch_row.at[0, :num_nodes].set(batch.astype(jnp.int32))
    return a_hat, g_src, g_dst, scat_dst, batch_row


def prepare_padded_params(params, c_pad, h_pad, p_pad, h2_pad, o_pad):
    H = params["gcn_w"].shape[1]

    # fused input projection: [C_pad, 2*H_pad] = [W_gcn | W_lin]
    w_gcn = _pad2(params["gcn_w"], c_pad, h_pad)
    w_lin = _pad2(params["lin_w"], c_pad, h_pad)
    w_proj = jnp.concatenate([w_gcn, w_lin], axis=1)          # [C_pad, 2*H_pad]
    b_gcn = _pad2(params["gcn_b"], 1, h_pad)
    b_lin = _pad2(params["lin_b"], 1, h_pad)

    w_p1 = _pad2(params["p1_w"], p_pad, h_pad)
    b_p1 = _pad2(params["p1_b"], 1, h_pad)
    w_p2 = _pad2(params["p2_w"], h_pad, h_pad)
    b_p2 = _pad2(params["p2_b"], 1, h_pad)

    # attention: [2H, 1] -> split into dst(x_i) / src(x_j) halves and replicate the
    # single output column across all lanes (lane-dense broadcast trick).
    att_w = params["att_w"]
    w_att_d = _pad2(jnp.broadcast_to(att_w[:H], (H, h_pad)), h_pad, h_pad)
    w_att_s = _pad2(jnp.broadcast_to(att_w[H:], (H, h_pad)), h_pad, h_pad)
    b_att = jnp.broadcast_to(params["att_b"], (1, h_pad)).astype(jnp.float32)

    # fusion: [2H, H] -> split so the lane-concat [gfeat, lfeat] is never materialized.
    fus_w = params["fus_w"]
    w_fus_g = _pad2(fus_w[:H], h_pad, h_pad)
    w_fus_l = _pad2(fus_w[H:], h_pad, h_pad)
    b_fus = _pad2(params["fus_b"], 1, h_pad)

    w1 = _pad2(params["l1_w"], h_pad, h2_pad)
    b1 = _pad2(params["l1_b"], 1, h2_pad)
    w2 = _pad2(params["l2_w"], h2_pad, o_pad)   # only column 0 is the real output
    b2 = _pad2(params["l2_b"], 1, o_pad)
    return (w_proj, b_gcn, b_lin, w_p1, b_p1, w_p2, b_p2,
            w_att_d, w_att_s, b_att, w_fus_g, w_fus_l, b_fus, w1, b1, w2, b2)


def pamnet_forward(params, x, edge_index, batch, pos, num_graphs):
    n, c = x.shape
    e = edge_index.shape[1]
    h = params["gcn_w"].shape[1]
    h2 = params["l1_w"].shape[1]

    n_pad = _ceil_to(n, 128)
    e_pad = _ceil_to(e, 128)
    c_pad = _ceil_to(c, 128)
    h_pad = _ceil_to(h, 128)
    h2_pad = _ceil_to(h2, 128)
    p_pad = 128          # pos has 3 coords -> padded lane dim
    o_pad = 128          # lane-dense padded output, real output is column 0
    g_pad = _ceil_to(num_graphs, 8)

    a_hat, g_src, g_dst, scat_dst, batch_row = build_graph_tensors(
        edge_index, batch, n, n_pad, e_pad)
    xp = _pad2(x, n_pad, c_pad)
    posp = _pad2(pos, n_pad, p_pad)
    padded_w = prepare_padded_params(params, c_pad, h_pad, p_pad, h2_pad, o_pad)

    vmem = pl.BlockSpec(memory_space=pltpu.MemorySpace.VMEM)
    n_inputs = 7 + len(padded_w)
    out_padded = pl.pallas_call(
        _pamnet_kernel,
        out_shape=jax.ShapeDtypeStruct((g_pad, o_pad), jnp.float32),
        in_specs=[vmem] * n_inputs,
        out_specs=vmem,
        compiler_params=pltpu.CompilerParams(vmem_limit_bytes=32 * 1024 * 1024),
    )(a_hat, g_src, g_dst, scat_dst, batch_row, xp, posp, *padded_w)

    return out_padded[:num_graphs, :1]


# ---------------------------------------------------------------------------
# Parameter init (weights stored [in, out], i.e. transposed vs torch Linear.weight)
# ---------------------------------------------------------------------------

def _init_linear(key, fan_in, fan_out):
    kw, kb = jax.random.split(key)
    bound = 1.0 / (fan_in ** 0.5)
    w = jax.random.uniform(kw, (fan_in, fan_out), jnp.float32, -bound, bound)
    b = jax.random.uniform(kb, (1, fan_out), jnp.float32, -bound, bound)
    return w, b


def init_params(key, in_channels, hidden):
    ks = jax.random.split(key, 8)
    p = {}
    p["gcn_w"], p["gcn_b"] = _init_linear(ks[0], in_channels, hidden)      # GCNConv
    p["lin_w"], p["lin_b"] = _init_linear(ks[1], in_channels, hidden)      # PAMConv.lin
    p["p1_w"], p["p1_b"] = _init_linear(ks[2], 3, hidden)                  # pos_mlp[0]
    p["p2_w"], p["p2_b"] = _init_linear(ks[3], hidden, hidden)             # pos_mlp[2]
    p["att_w"], p["att_b"] = _init_linear(ks[4], 2 * hidden, 1)            # PAMConv.att
    p["fus_w"], p["fus_b"] = _init_linear(ks[5], 2 * hidden, hidden)       # fusion
    p["l1_w"], p["l1_b"] = _init_linear(ks[6], hidden, hidden // 2)        # lin1
    p["l2_w"], p["l2_b"] = _init_linear(ks[7], hidden // 2, 1)             # lin2
    return p


# ---------------------------------------------------------------------------
# Pure-JAX reference (same semantics, no Pallas) for in-script sanity check
# ---------------------------------------------------------------------------

def pamnet_reference(params, x, edge_index, batch, pos, num_graphs):
    src, dst = edge_index[0], edge_index[1]
    n = x.shape[0]

    # GCN branch
    a = jnp.zeros((n, n), jnp.float32).at[dst, src].add(1.0)
    eye = jnp.eye(n, dtype=jnp.float32)
    a = a * (1.0 - eye) + eye
    deg = a.sum(axis=1)
    dinv = deg ** -0.5
    a_hat = dinv[:, None] * a * dinv[None, :]
    gfeat = jnp.maximum(a_hat @ (x @ params["gcn_w"]) + params["gcn_b"], 0.0)

    # PAMConv branch
    xl = x @ params["lin_w"] + params["lin_b"]
    x_j = xl[src]
    x_i = xl[dst]
    dpos = pos[dst] - pos[src]
    demb = jnp.maximum(dpos @ params["p1_w"] + params["p1_b"], 0.0)
    demb = demb @ params["p2_w"] + params["p2_b"]
    att_in = jnp.concatenate([x_i, x_j], axis=-1)
    att_logit = att_in @ params["att_w"] + params["att_b"]
    att = 1.0 / (1.0 + jnp.exp(-att_logit))
    msg = att * (x_j + demb)
    lfeat = jnp.zeros((n, xl.shape[1]), jnp.float32).at[dst].add(msg)
    lfeat = jnp.maximum(lfeat, 0.0)

    # fusion + pool + head
    combined = jnp.concatenate([gfeat, lfeat], axis=-1)
    fused = jnp.maximum(combined @ params["fus_w"] + params["fus_b"], 0.0)
    onehot = (batch[None, :] == jnp.arange(num_graphs)[:, None]).astype(jnp.float32)
    counts = jnp.maximum(onehot.sum(axis=1, keepdims=True), 1.0)
    pooled = (onehot @ fused) / counts
    h = jnp.maximum(pooled @ params["l1_w"] + params["l1_b"], 0.0)
    return h @ params["l2_w"] + params["l2_b"]


# ---------------------------------------------------------------------------
# Main
# ---------------------------------------------------------------------------

if __name__ == "__main__":
    key = jax.random.PRNGKey(0)
    k_x, k_e, k_pos, k_p = jax.random.split(key, 4)

    num_nodes = 16
    in_channels = 4
    hidden_channels = 32
    num_graphs = 2
    num_edges = 40

    x = jax.random.normal(k_x, (num_nodes, in_channels), jnp.float32)
    pos = jax.random.normal(k_pos, (num_nodes, 3), jnp.float32)
    edge_index = jax.random.randint(k_e, (2, num_edges), 0, num_nodes, jnp.int32)
    batch = jnp.concatenate([
        jnp.zeros((num_nodes // 2,), jnp.int32),
        jnp.ones((num_nodes - num_nodes // 2,), jnp.int32),
    ])

    params = init_params(k_p, in_channels, hidden_channels)

    out = pamnet_forward(params, x, edge_index, batch, pos, num_graphs)
    out = jax.block_until_ready(out)

    ref = pamnet_reference(params, x, edge_index, batch, pos, num_graphs)
    assert out.shape == (num_graphs, 1), out.shape
    assert jnp.allclose(out, ref, atol=1e-3, rtol=1e-3), (out, ref)

    print("KERNEL_OK")
</pallas_src>

<mosaic_0001>
module attributes {stable_mosaic.version = 11 : i64} {
  func.func @_pamnet_kernel(%arg0: memref<128x128xf32, #tpu.memory_space<vmem>>, %arg1: memref<128x128xf32, #tpu.memory_space<vmem>>, %arg2: memref<128x128xf32, #tpu.memory_space<vmem>>, %arg3: memref<128x128xf32, #tpu.memory_space<vmem>>, %arg4: memref<1x128xi32, #tpu.memory_space<vmem>>, %arg5: memref<128x128xf32, #tpu.memory_space<vmem>>, %arg6: memref<128x128xf32, #tpu.memory_space<vmem>>, %arg7: memref<128x256xf32, #tpu.memory_space<vmem>>, %arg8: memref<1x128xf32, #tpu.memory_space<vmem>>, %arg9: memref<1x128xf32, #tpu.memory_space<vmem>>, %arg10: memref<128x128xf32, #tpu.memory_space<vmem>>, %arg11: memref<1x128xf32, #tpu.memory_space<vmem>>, %arg12: memref<128x128xf32, #tpu.memory_space<vmem>>, %arg13: memref<1x128xf32, #tpu.memory_space<vmem>>, %arg14: memref<128x128xf32, #tpu.memory_space<vmem>>, %arg15: memref<128x128xf32, #tpu.memory_space<vmem>>, %arg16: memref<1x128xf32, #tpu.memory_space<vmem>>, %arg17: memref<128x128xf32, #tpu.memory_space<vmem>>, %arg18: memref<128x128xf32, #tpu.memory_space<vmem>>, %arg19: memref<1x128xf32, #tpu.memory_space<vmem>>, %arg20: memref<128x128xf32, #tpu.memory_space<vmem>>, %arg21: memref<1x128xf32, #tpu.memory_space<vmem>>, %arg22: memref<128x128xf32, #tpu.memory_space<vmem>>, %arg23: memref<1x128xf32, #tpu.memory_space<vmem>>, %arg24: memref<8x128xf32, #tpu.memory_space<vmem>>) attributes {dimension_semantics = [], scalar_prefetch = 0 : i64, scratch_operands = 0 : i64, tpu.core_type = #tpu.core_type<tc>} {
    %c0 = arith.constant 0 : index
    %c0_0 = arith.constant 0 : index
    %0 = vector.load %arg5[%c0, %c0_0] : memref<128x128xf32, #tpu.memory_space<vmem>>, vector<128x128xf32>
    %c0_1 = arith.constant 0 : index
    %c0_2 = arith.constant 0 : index
    %1 = vector.load %arg7[%c0_1, %c0_2] : memref<128x256xf32, #tpu.memory_space<vmem>>, vector<128x256xf32>
    %cst = arith.constant dense<0.000000e+00> : vector<128x256xf32>
    %2 = tpu.matmul %0, %1, %cst {dimension_numbers = #tpu.dot_dimension_numbers<[1], [0], [0], [1], [0, 0, 1, 1], [], []>} : vector<128x128xf32>, vector<128x256xf32>, vector<128x256xf32> -> vector<128x256xf32>
    %3 = vector.extract_strided_slice %2 {offsets = [0, 0], sizes = [128, 128], strides = [1, 1]} : vector<128x256xf32> to vector<128x128xf32>
    %4 = vector.extract_strided_slice %2 {offsets = [0, 128], sizes = [128, 128], strides = [1, 1]} : vector<128x256xf32> to vector<128x128xf32>
    %c0_3 = arith.constant 0 : index
    %c0_4 = arith.constant 0 : index
    %5 = vector.load %arg9[%c0_3, %c0_4] : memref<1x128xf32, #tpu.memory_space<vmem>>, vector<1x128xf32>
    %6 = vector.broadcast %5 : vector<1x128xf32> to vector<128x128xf32>
    %7 = arith.addf %4, %6 : vector<128x128xf32>
    %c0_5 = arith.constant 0 : index
    %c0_6 = arith.constant 0 : index
    %8 = vector.load %arg0[%c0_5, %c0_6] : memref<128x128xf32, #tpu.memory_space<vmem>>, vector<128x128xf32>
    %cst_7 = arith.constant dense<0.000000e+00> : vector<128x128xf32>
    %9 = tpu.matmul %8, %3, %cst_7 {dimension_numbers = #tpu.dot_dimension_numbers<[1], [0], [0], [1], [0, 0, 1, 1], [], []>} : vector<128x128xf32>, vector<128x128xf32>, vector<128x128xf32> -> vector<128x128xf32>
    %c0_8 = arith.constant 0 : index
    %c0_9 = arith.constant 0 : index
    %10 = vector.load %arg8[%c0_8, %c0_9] : memref<1x128xf32, #tpu.memory_space<vmem>>, vector<1x128xf32>
    %11 = vector.broadcast %10 : vector<1x128xf32> to vector<128x128xf32>
    %12 = arith.addf %9, %11 : vector<128x128xf32>
    %cst_10 = arith.constant 0.000000e+00 : f32
    %13 = vector.broadcast %cst_10 : f32 to vector<128x128xf32>
    %14 = arith.maximumf %12, %13 : vector<128x128xf32>
    %c0_11 = arith.constant 0 : index
    %c0_12 = arith.constant 0 : index
    %15 = vector.load %arg1[%c0_11, %c0_12] : memref<128x128xf32, #tpu.memory_space<vmem>>, vector<128x128xf32>
    %c0_13 = arith.constant 0 : index
    %c0_14 = arith.constant 0 : index
    %16 = vector.load %arg2[%c0_13, %c0_14] : memref<128x128xf32, #tpu.memory_space<vmem>>, vector<128x128xf32>
    %cst_15 = arith.constant dense<0.000000e+00> : vector<128x128xf32>
    %17 = tpu.matmul %15, %7, %cst_15 {dimension_numbers = #tpu.dot_dimension_numbers<[1], [0], [0], [1], [0, 0, 1, 1], [], []>} : vector<128x128xf32>, vector<128x128xf32>, vector<128x128xf32> -> vector<128x128xf32>
    %cst_16 = arith.constant dense<0.000000e+00> : vector<128x128xf32>
    %18 = tpu.matmul %16, %7, %cst_16 {dimension_numbers = #tpu.dot_dimension_numbers<[1], [0], [0], [1], [0, 0, 1, 1], [], []>} : vector<128x128xf32>, vector<128x128xf32>, vector<128x128xf32> -> vector<128x128xf32>
    %19 = arith.subf %16, %15 : vector<128x128xf32>
    %c0_17 = arith.constant 0 : index
    %c0_18 = arith.constant 0 : index
    %20 = vector.load %arg6[%c0_17, %c0_18] : memref<128x128xf32, #tpu.memory_space<vmem>>, vector<128x128xf32>
    %cst_19 = arith.constant dense<0.000000e+00> : vector<128x128xf32>
    %21 = tpu.matmul %19, %20, %cst_19 {dimension_numbers = #tpu.dot_dimension_numbers<[1], [0], [0], [1], [0, 0, 1, 1], [], []>} : vector<128x128xf32>, vector<128x128xf32>, vector<128x128xf32> -> vector<128x128xf32>
    %c0_20 = arith.constant 0 : index
    %c0_21 = arith.constant 0 : index
    %22 = vector.load %arg10[%c0_20, %c0_21] : memref<128x128xf32, #tpu.memory_space<vmem>>, vector<128x128xf32>
    %cst_22 = arith.constant dense<0.000000e+00> : vector<128x128xf32>
    %23 = tpu.matmul %21, %22, %cst_22 {dimension_numbers = #tpu.dot_dimension_numbers<[1], [0], [0], [1], [0, 0, 1, 1], [], []>} : vector<128x128xf32>, vector<128x128xf32>, vector<128x128xf32> -> vector<128x128xf32>
    %c0_23 = arith.constant 0 : index
    %c0_24 = arith.constant 0 : index
    %24 = vector.load %arg11[%c0_23, %c0_24] : memref<1x128xf32, #tpu.memory_space<vmem>>, vector<1x128xf32>
    %25 = vector.broadcast %24 : vector<1x128xf32> to vector<128x128xf32>
    %26 = arith.addf %23, %25 : vector<128x128xf32>
    %cst_25 = arith.constant 0.000000e+00 : f32
    %27 = vector.broadcast %cst_25 : f32 to vector<128x128xf32>
    %28 = arith.maximumf %26, %27 : vector<128x128xf32>
    %c0_26 = arith.constant 0 : index
    %c0_27 = arith.constant 0 : index
    %29 = vector.load %arg12[%c0_26, %c0_27] : memref<128x128xf32, #tpu.memory_space<vmem>>, vector<128x128xf32>
    %cst_28 = arith.constant dense<0.000000e+00> : vector<128x128xf32>
    %30 = tpu.matmul %28, %29, %cst_28 {dimension_numbers = #tpu.dot_dimension_numbers<[1], [0], [0], [1], [0, 0, 1, 1], [], []>} : vector<128x128xf32>, vector<128x128xf32>, vector<128x128xf32> -> vector<128x128xf32>
    %c0_29 = arith.constant 0 : index
    %c0_30 = arith.constant 0 : index
    %31 = vector.load %arg13[%c0_29, %c0_30] : memref<1x128xf32, #tpu.memory_space<vmem>>, vector<1x128xf32>
    %32 = vector.broadcast %31 : vector<1x128xf32> to vector<128x128xf32>
    %33 = arith.addf %30, %32 : vector<128x128xf32>
    %c0_31 = arith.constant 0 : index
    %c0_32 = arith.constant 0 : index
    %34 = vector.load %arg14[%c0_31, %c0_32] : memref<128x128xf32, #tpu.memory_space<vmem>>, vector<128x128xf32>
    %cst_33 = arith.constant dense<0.000000e+00> : vector<128x128xf32>
    %35 = tpu.matmul %18, %34, %cst_33 {dimension_numbers = #tpu.dot_dimension_numbers<[1], [0], [0], [1], [0, 0, 1, 1], [], []>} : vector<128x128xf32>, vector<128x128xf32>, vector<128x128xf32> -> vector<128x128xf32>
    %c0_34 = arith.constant 0 : index
    %c0_35 = arith.constant 0 : index
    %36 = vector.load %arg15[%c0_34, %c0_35] : memref<128x128xf32, #tpu.memory_space<vmem>>, vector<128x128xf32>
    %cst_36 = arith.constant dense<0.000000e+00> : vector<128x128xf32>
    %37 = tpu.matmul %17, %36, %cst_36 {dimension_numbers = #tpu.dot_dimension_numbers<[1], [0], [0], [1], [0, 0, 1, 1], [], []>} : vector<128x128xf32>, vector<128x128xf32>, vector<128x128xf32> -> vector<128x128xf32>
    %38 = arith.addf %35, %37 : vector<128x128xf32>
    %c0_37 = arith.constant 0 : index
    %c0_38 = arith.constant 0 : index
    %39 = vector.load %arg16[%c0_37, %c0_38] : memref<1x128xf32, #tpu.memory_space<vmem>>, vector<1x128xf32>
    %40 = vector.broadcast %39 : vector<1x128xf32> to vector<128x128xf32>
    %41 = arith.addf %38, %40 : vector<128x128xf32>
    %cst_39 = arith.constant 0.000000e+00 : f32
    %42 = vector.broadcast %cst_39 : f32 to vector<128x128xf32>
    %43 = arith.subf %42, %41 : vector<128x128xf32>
    %44 = math.exp %43 : vector<128x128xf32>
    %cst_40 = arith.constant 1.000000e+00 : f32
    %45 = vector.broadcast %cst_40 : f32 to vector<128x128xf32>
    %46 = arith.addf %45, %44 : vector<128x128xf32>
    %cst_41 = arith.constant 1.000000e+00 : f32
    %47 = vector.broadcast %cst_41 : f32 to vector<128x128xf32>
    %48 = arith.divf %47, %46 : vector<128x128xf32>
    %49 = arith.addf %17, %33 : vector<128x128xf32>
    %50 = arith.mulf %48, %49 : vector<128x128xf32>
    %c0_42 = arith.constant 0 : index
    %c0_43 = arith.constant 0 : index
    %51 = vector.load %arg3[%c0_42, %c0_43] : memref<128x128xf32, #tpu.memory_space<vmem>>, vector<128x128xf32>
    %cst_44 = arith.constant dense<0.000000e+00> : vector<128x128xf32>
    %52 = tpu.matmul %51, %50, %cst_44 {dimension_numbers = #tpu.dot_dimension_numbers<[1], [0], [0], [1], [0, 0, 1, 1], [], []>} : vector<128x128xf32>, vector<128x128xf32>, vector<128x128xf32> -> vector<128x128xf32>
    %cst_45 = arith.constant 0.000000e+00 : f32
    %53 = vector.broadcast %cst_45 : f32 to vector<128x128xf32>
    %54 = arith.maximumf %52, %53 : vector<128x128xf32>
    %c0_46 = arith.constant 0 : index
    %c0_47 = arith.constant 0 : index
    %55 = vector.load %arg17[%c0_46, %c0_47] : memref<128x128xf32, #tpu.memory_space<vmem>>, vector<128x128xf32>
    %cst_48 = arith.constant dense<0.000000e+00> : vector<128x128xf32>
    %56 = tpu.matmul %14, %55, %cst_48 {dimension_numbers = #tpu.dot_dimension_numbers<[1], [0], [0], [1], [0, 0, 1, 1], [], []>} : vector<128x128xf32>, vector<128x128xf32>, vector<128x128xf32> -> vector<128x128xf32>
    %c0_49 = arith.constant 0 : index
    %c0_50 = arith.constant 0 : index
    %57 = vector.load %arg18[%c0_49, %c0_50] : memref<128x128xf32, #tpu.memory_space<vmem>>, vector<128x128xf32>
    %cst_51 = arith.constant dense<0.000000e+00> : vector<128x128xf32>
    %58 = tpu.matmul %54, %57, %cst_51 {dimension_numbers = #tpu.dot_dimension_numbers<[1], [0], [0], [1], [0, 0, 1, 1], [], []>} : vector<128x128xf32>, vector<128x128xf32>, vector<128x128xf32> -> vector<128x128xf32>
    %59 = arith.addf %56, %58 : vector<128x128xf32>
    %c0_52 = arith.constant 0 : index
    %c0_53 = arith.constant 0 : index
    %60 = vector.load %arg19[%c0_52, %c0_53] : memref<1x128xf32, #tpu.memory_space<vmem>>, vector<1x128xf32>
    %61 = vector.broadcast %60 : vector<1x128xf32> to vector<128x128xf32>
    %62 = arith.addf %59, %61 : vector<128x128xf32>
    %cst_54 = arith.constant 0.000000e+00 : f32
    %63 = vector.broadcast %cst_54 : f32 to vector<128x128xf32>
    %64 = arith.maximumf %62, %63 : vector<128x128xf32>
    %65 = tpu.iota {dimensions = array<i32: 0>} : vector<8x128xi32>
    %c0_55 = arith.constant 0 : index
    %c0_56 = arith.constant 0 : index
    %66 = vector.load %arg4[%c0_55, %c0_56] : memref<1x128xi32, #tpu.memory_space<vmem>>, vector<1x128xi32>
    %67 = vector.broadcast %66 : vector<1x128xi32> to vector<8x128xi32>
    %68 = arith.cmpi eq, %65, %67 : vector<8x128xi32>
    %69 = arith.extui %68 : vector<8x128xi1> to vector<8x128xi32>
    %70 = arith.sitofp %69 : vector<8x128xi32> to vector<8x128xf32>
    %cst_57 = arith.constant dense<0.000000e+00> : vector<8xf32>
    %71 = vector.multi_reduction <add>, %70, %cst_57 [1] : vector<8x128xf32> to vector<8xf32>
    %72 = vector.shape_cast %71 : vector<8xf32> to vector<8x1xf32>
    %cst_58 = arith.constant 1.000000e+00 : f32
    %73 = vector.broadcast %cst_58 : f32 to vector<8x1xf32>
    %74 = arith.maximumf %72, %73 : vector<8x1xf32>
    %cst_59 = arith.constant dense<0.000000e+00> : vector<8x128xf32>
    %75 = tpu.matmul %70, %64, %cst_59 {dimension_numbers = #tpu.dot_dimension_numbers<[1], [0], [0], [1], [0, 0, 1, 1], [], []>} : vector<8x128xf32>, vector<128x128xf32>, vector<8x128xf32> -> vector<8x128xf32>
    %76 = vector.broadcast %74 : vector<8x1xf32> to vector<8x128xf32>
    %77 = arith.divf %75, %76 : vector<8x128xf32>
    %c0_60 = arith.constant 0 : index
    %c0_61 = arith.constant 0 : index
    %78 = vector.load %arg20[%c0_60, %c0_61] : memref<128x128xf32, #tpu.memory_space<vmem>>, vector<128x128xf32>
    %cst_62 = arith.constant dense<0.000000e+00> : vector<8x128xf32>
    %79 = tpu.matmul %77, %78, %cst_62 {dimension_numbers = #tpu.dot_dimension_numbers<[1], [0], [0], [1], [0, 0, 1, 1], [], []>} : vector<8x128xf32>, vector<128x128xf32>, vector<8x128xf32> -> vector<8x128xf32>
    %c0_63 = arith.constant 0 : index
    %c0_64 = arith.constant 0 : index
    %80 = vector.load %arg21[%c0_63, %c0_64] : memref<1x128xf32, #tpu.memory_space<vmem>>, vector<1x128xf32>
    %81 = vector.broadcast %80 : vector<1x128xf32> to vector<8x128xf32>
    %82 = arith.addf %79, %81 : vector<8x128xf32>
    %cst_65 = arith.constant 0.000000e+00 : f32
    %83 = vector.broadcast %cst_65 : f32 to vector<8x128xf32>
    %84 = arith.maximumf %82, %83 : vector<8x128xf32>
    %c0_66 = arith.constant 0 : index
    %c0_67 = arith.constant 0 : index
    %85 = vector.load %arg22[%c0_66, %c0_67] : memref<128x128xf32, #tpu.memory_space<vmem>>, vector<128x128xf32>
    %cst_68 = arith.constant dense<0.000000e+00> : vector<8x128xf32>
    %86 = tpu.matmul %84, %85, %cst_68 {dimension_numbers = #tpu.dot_dimension_numbers<[1], [0], [0], [1], [0, 0, 1, 1], [], []>} : vector<8x128xf32>, vector<128x128xf32>, vector<8x128xf32> -> vector<8x128xf32>
    %c0_69 = arith.constant 0 : index
    %c0_70 = arith.constant 0 : index
    %87 = vector.load %arg23[%c0_69, %c0_70] : memref<1x128xf32, #tpu.memory_space<vmem>>, vector<1x128xf32>
    %88 = vector.broadcast %87 : vector<1x128xf32> to vector<8x128xf32>
    %89 = arith.addf %86, %88 : vector<8x128xf32>
    %c0_71 = arith.constant 0 : index
    %c0_72 = arith.constant 0 : index
    %90 = vector.load %arg24[%c0_71, %c0_72] : memref<8x128xf32, #tpu.memory_space<vmem>>, vector<8x128xf32>
    tpu.vector_store %arg24[%c0_71, %c0_72], %89 {strides = array<i32>} : memref<8x128xf32, #tpu.memory_space<vmem>>, vector<8x128xf32>,
    return
  }
}

</mosaic_0001>

<bundles_post_ra>
// kernel: tpu_custom_call.1
= control target key start
LH: loop header
LB: loop body
LE: loop exit
PB: predicated region body
PF: predicated region fallthrough
CT: control target
= control target key end

     0   :  { %s5794_s0 = inlined_call_operand.hbm [shape: f32[128,128], index: 0, kind: input, shape index: {}]   ;;  %s5795_s1 = inlined_call_operand.hbm [shape: f32[128,128], index: 1, kind: input, shape index: {}]   ;;  %s5796_s2 = inlined_call_operand.hbm [shape: f32[128,128], index: 2, kind: input, shape index: {}]   ;;  %s5797_s3 = inlined_call_operand.hbm [shape: f32[128,128], index: 3, kind: input, shape index: {}]   ;;  %s5798_s4 = inlined_call_operand.vmem [shape: s32[1,128], index: 4, kind: input, shape index: {}]   ;;  %s5799_s5 = inlined_call_operand.hbm [shape: f32[128,128], index: 5, kind: input, shape index: {}]   ;;  %s5800_s6 = inlined_call_operand.hbm [shape: f32[128,128], index: 6, kind: input, shape index: {}]   ;;  %s5801_s7 = inlined_call_operand.hbm [shape: f32[128,256], index: 7, kind: input, shape index: {}]   ;;  %s5802_s8 = inlined_call_operand.vmem [shape: f32[1,128], index: 8, kind: input, shape index: {}]   ;;  %s5803_s9 = inlined_call_operand.vmem [shape: f32[1,128], index: 9, kind: input, shape index: {}]   ;;  %s5804_s10 = inlined_call_operand.hbm [shape: f32[128,128], index: 10, kind: input, shape index: {}]   ;;  %s5805_s11 = inlined_call_operand.vmem [shape: f32[1,128], index: 11, kind: input, shape index: {}]   ;;  %s5806_s12 = inlined_call_operand.hbm [shape: f32[128,128], index: 12, kind: input, shape index: {}]   ;;  %s5807_s13 = inlined_call_operand.vmem [shape: f32[1,128], index: 13, kind: input, shape index: {}]   ;;  %s5808_s14 = inlined_call_operand.hbm [shape: f32[128,128], index: 14, kind: input, shape index: {}]   ;;  %s5809_s15 = inlined_call_operand.hbm [shape: f32[128,128], index: 15, kind: input, shape index: {}]   ;;  %s5810_s16 = inlined_call_operand.vmem [shape: f32[1,128], index: 16, kind: input, shape index: {}]   ;;  %s5811_s17 = inlined_call_operand.hbm [shape: f32[128,128], index: 17, kind: input, shape index: {}]   ;;  %s5812_s18 = inlined_call_operand.hbm [shape: f32[128,128], index: 18, kind: input, shape index: {}]   ;;  %s5813_s19 = inlined_call_operand.vmem [shape: f32[1,128], index: 19, kind: input, shape index: {}]   ;;  %s5814_s20 = inlined_call_operand.hbm [shape: f32[128,128], index: 20, kind: input, shape index: {}]   ;;  %s5815_s21 = inlined_call_operand.vmem [shape: f32[1,128], index: 21, kind: input, shape index: {}]   ;;  %s5816_s22 = inlined_call_operand.hbm [shape: f32[128,128], index: 22, kind: input, shape index: {}]   ;;  %s5817_s23 = inlined_call_operand.vmem [shape: f32[1,128], index: 23, kind: input, shape index: {}]   ;;  %s5818_s24 = inlined_call_operand.hbm [shape: f32[8,128], index: 24, kind: output, shape index: {}]  }
   0x1   :  { %5829 = sst [smem:[#allocation39_spill]] %s5794_s0 }
   0x2   :  { %5830 = sst [smem:[#allocation40_spill]] %s5795_s1 }
   0x3   :  { %5831 = sst [smem:[#allocation41_spill]] %s5796_s2 }
   0x4   :  { %5832 = sst [smem:[#allocation42_spill]] %s5797_s3 }
   0x5   :  { %5833 = sst [smem:[#allocation43_spill]] %s5798_s4 }
   0x6   :  { %5834 = sst [smem:[#allocation44_spill]] %s5799_s5 }
   0x7   :  { %5835 = sst [smem:[#allocation45_spill]] %s5800_s6 }
   0x8   :  { %5836 = sst [smem:[#allocation46_spill]] %s5801_s7 }
   0x9   :  { %5837 = sst [smem:[#allocation47_spill]] %s5802_s8 }
   0xa   :  { %5838 = sst [smem:[#allocation48_spill]] %s5815_s21 }
   0xb   :  { %5839 = sst [smem:[#allocation49_spill]] %s5817_s23 }
   0xc   :  { %5840 = sst [smem:[#allocation50_spill]] %s5818_s24 }
   0xd   :  { %29 = vsyncpa [#allocation3], 0 }
   0xe   :  { %30 = vsyncpa [#allocation6], 0 }
   0xf   :  { %31 = vsyncpa [#allocation9], 0 }
  0x10   :  { %32 = vsyncpa [#allocation12], 0 }
  0x11   :  { %33 = vsyncpa [#allocation15], 0 }
  0x12   :  { %34 = vsyncpa [#allocation18], 0 }
  0x13   :  { %35 = vsyncpa [#allocation21], 0 }
  0x14   :  { %36 = vsyncpa [#allocation24], 0 }
  0x15   :  { %37 = vsyncpa [#allocation4], 0  ;;  %s4937_s5 = smov [#allocation5]   ;;  %s4938_s27 = smov [#allocation8]  }
  0x16   :  { %s55_s26 = sshll.u32 %s4937_s5, 4  ;;  %s79_s28 = sshll.u32 %s4938_s27, 4  ;;  %s56_s26 = int_to_ptr.vmem [resolvable:$true] %s55_s26  ;;  %s5086_s28 = int_to_ptr.vmem [resolvable:$true] %s79_s28 }
  0x17   :  { %s5841_s29 = sld [smem:[#allocation40_spill]] }
  0x1d   :  { %s4567_s0 = scalar_lea.hbm %s5841_s29, 2048 }
  0x1e   :  { %p4568_p0 = scmp.ne.s32.totalorder %s5841_s29, %s4567_s0  ;;  %p4571_p1 = scmp.lt.u32.totalorder %s4567_s0, %s5841_s29 }
  0x20   :  { %p4573_p2 = pnand %p4571_p1, %p4568_p0 }
  0x22   :  { %4576 = shalt.err (!%p4573_p2)
}
  0x23   :  { %s4577_s8 = scalar_lea.vmem %s56_s26, 2048  ;;  %p4582_p4 = scmp.lt.s32.totalorder %s56_s26, %s56_s26 }
  0x24   :  { %p4578_p3 = scmp.ne.s32.totalorder %s56_s26, %s4577_s8  ;;  %p4583_p5 = scmp.lt.s32.totalorder %s4577_s8, %s4577_s8 }
  0x26   :  { %p4584_p6 = por %p4583_p5, %p4582_p4 }
  0x28   :  { %p4585_p7 = pnand %p4584_p6, %p4578_p3 }
  0x2a   :  { %4588 = shalt.err (!%p4585_p7)
}
  0x2b   :  { %s4939_s4 = smov 128   ;;  %s4940_s1 = smov 8  }
  0x2c   :  { %61 = dma.hbm_to_vmem [thread:$0]  %s5841_s29, 2048, %s56_s26, [#allocation6], %s4939_s4, %s4939_s4, %s4940_s1  }
  0x2d   :  { %s5842_s0 = sld [smem:[#allocation42_spill]] }
  0x33   :  { %s4589_s7 = scalar_lea.hbm %s5842_s0, 2048 }
  0x34   :  { %p4590_p8 = scmp.ne.s32.totalorder %s5842_s0, %s4589_s7  ;;  %p4593_p9 = scmp.lt.u32.totalorder %s4589_s7, %s5842_s0 }
  0x36   :  { %p4595_p10 = pnand %p4593_p9, %p4590_p8 }
  0x38   :  { %4598 = shalt.err (!%p4595_p10)
}
  0x39   :  { %s4599_s24 = scalar_lea.vmem %s5086_s28, 2048  ;;  %p4604_p12 = scmp.lt.s32.totalorder %s5086_s28, %s5086_s28 }
  0x3a   :  { %p4600_p11 = scmp.ne.s32.totalorder %s5086_s28, %s4599_s24  ;;  %p4605_p13 = scmp.lt.s32.totalorder %s4599_s24, %s4599_s24 }
  0x3c   :  { %p4606_p0 = por %p4605_p13, %p4604_p12 }
  0x3e   :  { %p4607_p1 = pnand %p4606_p0, %p4600_p11 }
  0x40   :  { %4610 = shalt.err (!%p4607_p1)
}
  0x41   :  { %85 = dma.hbm_to_vmem [thread:$0]  %s5842_s0, 2048, %s5086_s28, [#allocation9], %s4939_s4, %s4939_s4, %s4940_s1  }
  0x42   :  { %s4941_s5 = smov [#allocation11]   ;;  %s4942_s6 = smov [#allocation14]  }
  0x43   :  { %s105_s27 = sshll.u32 %s4941_s5, 4  ;;  %s133_s2 = sshll.u32 %s4942_s6, 4  ;;  %s106_s27 = int_to_ptr.vmem [resolvable:$true] %s105_s27  ;;  %s5123_s2 = int_to_ptr.vmem [resolvable:$true] %s133_s2 }
  0x44   :  { %s5843_s30 = sld [smem:[#allocation45_spill]] }
  0x4a   :  { %s4611_s3 = scalar_lea.hbm %s5843_s30, 2048 }
  0x4b   :  { %p4612_p2 = scmp.ne.s32.totalorder %s5843_s30, %s4611_s3  ;;  %p4615_p3 = scmp.lt.u32.totalorder %s4611_s3, %s5843_s30 }
  0x4d   :  { %p4617_p4 = pnand %p4615_p3, %p4612_p2 }
  0x4f   :  { %4620 = shalt.err (!%p4617_p4)
}
  0x50   :  { %s4621_s28 = scalar_lea.vmem %s106_s27, 2048  ;;  %p4626_p6 = scmp.lt.s32.totalorder %s106_s27, %s106_s27 }
  0x51   :  { %p4622_p5 = scmp.ne.s32.totalorder %s106_s27, %s4621_s28  ;;  %p4627_p7 = scmp.lt.s32.totalorder %s4621_s28, %s4621_s28 }
  0x53   :  { %p4628_p8 = por %p4627_p7, %p4626_p6 }
  0x55   :  { %p4629_p9 = pnand %p4628_p8, %p4622_p5 }
  0x57   :  { %4632 = shalt.err (!%p4629_p9)
}
  0x58   :  { %111 = dma.hbm_to_vmem [thread:$0]  %s5843_s30, 2048, %s106_s27, [#allocation12], %s4939_s4, %s4939_s4, %s4940_s1  }
  0x59   :  { %s4633_s21 = scalar_lea.hbm %s5804_s10, 2048 }
  0x5a   :  { %p4634_p10 = scmp.ne.s32.totalorder %s5804_s10, %s4633_s21  ;;  %p4637_p11 = scmp.lt.u32.totalorder %s4633_s21, %s5804_s10 }
  0x5c   :  { %p4639_p12 = pnand %p4637_p11, %p4634_p10 }
  0x5e   :  { %4642 = shalt.err (!%p4639_p12)
}
  0x5f   :  { %s4643_s3 = scalar_lea.vmem %s5123_s2, 2048  ;;  %p4648_p0 = scmp.lt.s32.totalorder %s5123_s2, %s5123_s2 }
  0x60   :  { %p4644_p13 = scmp.ne.s32.totalorder %s5123_s2, %s4643_s3  ;;  %p4649_p1 = scmp.lt.s32.totalorder %s4643_s3, %s4643_s3 }
  0x62   :  { %p4650_p2 = por %p4649_p1, %p4648_p0 }
  0x64   :  { %p4651_p3 = pnand %p4650_p2, %p4644_p13 }
  0x66   :  { %4654 = shalt.err (!%p4651_p3)
}
  0x67   :  { %139 = dma.hbm_to_vmem [thread:$0]  %s5804_s10, 2048, %s5123_s2, [#allocation15], %s4939_s4, %s4939_s4, %s4940_s1  }
  0x68   :  { %s4943_s25 = smov [#allocation17]   ;;  %s4944_s28 = smov [#allocation20]  }
  0x69   :  { %s161_s8 = sshll.u32 %s4943_s25, 4  ;;  %s187_s0 = sshll.u32 %s4944_s28, 4  ;;  %s162_s8 = int_to_ptr.vmem [resolvable:$true] %s161_s8  ;;  %s5160_s0 = int_to_ptr.vmem [resolvable:$true] %s187_s0 }
  0x6a   :  { %s4655_s5 = scalar_lea.hbm %s5808_s14, 2048 }
  0x6b   :  { %p4656_p4 = scmp.ne.s32.totalorder %s5808_s14, %s4655_s5  ;;  %p4659_p5 = scmp.lt.u32.totalorder %s4655_s5, %s5808_s14 }
  0x6d   :  { %p4661_p6 = pnand %p4659_p5, %p4656_p4 }
  0x6f   :  { %4664 = shalt.err (!%p4661_p6)
}
  0x70   :  { %s4665_s10 = scalar_lea.vmem %s162_s8, 2048  ;;  %p4670_p8 = scmp.lt.s32.totalorder %s162_s8, %s162_s8 }
  0x71   :  { %p4666_p7 = scmp.ne.s32.totalorder %s162_s8, %s4665_s10  ;;  %p4671_p9 = scmp.lt.s32.totalorder %s4665_s10, %s4665_s10 }
  0x73   :  { %p4672_p10 = por %p4671_p9, %p4670_p8 }
  0x75   :  { %p4673_p11 = pnand %p4672_p10, %p4666_p7 }
  0x77   :  { %4676 = shalt.err (!%p4673_p11)
}
  0x78   :  { %167 = dma.hbm_to_vmem [thread:$0]  %s5808_s14, 2048, %s162_s8, [#allocation18], %s4939_s4, %s4939_s4, %s4940_s1  }
  0x79   :  { %s4677_s30 = scalar_lea.hbm %s5811_s17, 2048 }
  0x7a   :  { %p4678_p12 = scmp.ne.s32.totalorder %s5811_s17, %s4677_s30  ;;  %p4681_p13 = scmp.lt.u32.totalorder %s4677_s30, %s5811_s17 }
  0x7c   :  { %p4683_p0 = pnand %p4681_p13, %p4678_p12 }
  0x7e   :  { %4686 = shalt.err (!%p4683_p0)
}
  0x7f   :  { %s4687_s5 = scalar_lea.vmem %s5160_s0, 2048  ;;  %p4692_p2 = scmp.lt.s32.totalorder %s5160_s0, %s5160_s0 }
  0x80   :  { %p4688_p1 = scmp.ne.s32.totalorder %s5160_s0, %s4687_s5  ;;  %p4693_p3 = scmp.lt.s32.totalorder %s4687_s5, %s4687_s5 }
  0x82   :  { %p4694_p4 = por %p4693_p3, %p4692_p2 }
  0x84   :  { %p4695_p5 = pnand %p4694_p4, %p4688_p1 }
  0x86   :  { %4698 = shalt.err (!%p4695_p5)
}
  0x87   :  { %193 = dma.hbm_to_vmem [thread:$0]  %s5811_s17, 2048, %s5160_s0, [#allocation21], %s4939_s4, %s4939_s4, %s4940_s1  }
  0x88   :  { %s4945_s21 = smov [#allocation23]   ;;  %s4946_s6 = smov [#allocation2]  }
  0x89   :  { %s213_s23 = sshll.u32 %s4945_s21, 4  ;;  %s43_s7 = sshll.u32 %s4946_s6, 4  ;;  %s214_s23 = int_to_ptr.vmem [resolvable:$true] %s213_s23  ;;  %s5197_s7 = int_to_ptr.vmem [resolvable:$true] %s43_s7 }
  0x8a   :  { %s4699_s24 = scalar_lea.hbm %s5814_s20, 2048 }
  0x8b   :  { %p4700_p6 = scmp.ne.s32.totalorder %s5814_s20, %s4699_s24  ;;  %p4703_p7 = scmp.lt.u32.totalorder %s4699_s24, %s5814_s20 }
  0x8d   :  { %p4705_p8 = pnand %p4703_p7, %p4700_p6 }
  0x8f   :  { %4708 = shalt.err (!%p4705_p8)
}
  0x90   :  { %s4709_s17 = scalar_lea.vmem %s214_s23, 2048  ;;  %p4714_p10 = scmp.lt.s32.totalorder %s214_s23, %s214_s23 }
  0x91   :  { %p4710_p9 = scmp.ne.s32.totalorder %s214_s23, %s4709_s17  ;;  %p4715_p11 = scmp.lt.s32.totalorder %s4709_s17, %s4709_s17 }
  0x93   :  { %p4716_p12 = por %p4715_p11, %p4714_p10 }
  0x95   :  { %p4717_p13 = pnand %p4716_p12, %p4710_p9 }
  0x97   :  { %4720 = shalt.err (!%p4717_p13)
}
  0x98   :  { %219 = dma.hbm_to_vmem [thread:$0]  %s5814_s20, 2048, %s214_s23, [#allocation24], %s4939_s4, %s4939_s4, %s4940_s1  }
  0x99   :  { %s5844_s5 = sld [smem:[#allocation39_spill]] }
  0x9f   :  { %s4721_s14 = scalar_lea.hbm %s5844_s5, 2048 }
  0xa0   :  { %p4722_p0 = scmp.ne.s32.totalorder %s5844_s5, %s4721_s14  ;;  %p4725_p1 = scmp.lt.u32.totalorder %s4721_s14, %s5844_s5 }
  0xa2   :  { %p4727_p2 = pnand %p4725_p1, %p4722_p0 }
  0xa4   :  { %4730 = shalt.err (!%p4727_p2)
}
  0xa5   :  { %s4731_s2 = scalar_lea.vmem %s5197_s7, 2048  ;;  %p4736_p4 = scmp.lt.s32.totalorder %s5197_s7, %s5197_s7 }
  0xa6   :  { %p4732_p3 = scmp.ne.s32.totalorder %s5197_s7, %s4731_s2  ;;  %p4737_p5 = scmp.lt.s32.totalorder %s4731_s2, %s4731_s2 }
  0xa8   :  { %p4738_p6 = por %p4737_p5, %p4736_p4 }
  0xaa   :  { %p4739_p7 = pnand %p4738_p6, %p4732_p3 }
  0xac   :  { %4742 = shalt.err (!%p4739_p7)
}
  0xad   :  { %49 = dma.hbm_to_vmem [thread:$0]  %s5844_s5, 2048, %s5197_s7, [#allocation3], %s4939_s4, %s4939_s4, %s4940_s1  }
  0xae   :  { %s4947_s24 = smov [#allocation7]   ;;  %s4948_s27 = smov [#allocation10]  }
  0xaf   :  { %s67_s3 = sshll.u32 %s4947_s24, 4  ;;  %s93_s30 = sshll.u32 %s4948_s27, 4  ;;  %s68_s3 = int_to_ptr.vmem [resolvable:$true] %s67_s3  ;;  %s5234_s30 = int_to_ptr.vmem [resolvable:$true] %s93_s30 }
  0xb0   :  { %s5845_s0 = sld [smem:[#allocation41_spill]] }
  0xb6   :  { %s4743_s28 = scalar_lea.hbm %s5845_s0, 2048 }
  0xb7   :  { %p4744_p8 = scmp.ne.s32.totalorder %s5845_s0, %s4743_s28  ;;  %p4747_p9 = scmp.lt.u32.totalorder %s4743_s28, %s5845_s0 }
  0xb9   :  { %p4749_p10 = pnand %p4747_p9, %p4744_p8 }
  0xbb   :  { %4752 = shalt.err (!%p4749_p10)
}
  0xbc   :  { %s4753_s7 = scalar_lea.vmem %s68_s3, 2048  ;;  %p4758_p12 = scmp.lt.s32.totalorder %s68_s3, %s68_s3 }
  0xbd   :  { %p4754_p11 = scmp.ne.s32.totalorder %s68_s3, %s4753_s7  ;;  %p4759_p13 = scmp.lt.s32.totalorder %s4753_s7, %s4753_s7 }
  0xbf   :  { %p4760_p0 = por %p4759_p13, %p4758_p12 }
  0xc1   :  { %p4761_p1 = pnand %p4760_p0, %p4754_p11 }
  0xc3   :  { %4764 = shalt.err (!%p4761_p1)
}
  0xc4   :  { %73 = dma.hbm_to_vmem [thread:$0]  %s5845_s0, 2048, %s68_s3, [#allocation6], %s4939_s4, %s4939_s4, %s4940_s1  }
  0xc5   :  { %s5846_s2 = sld [smem:[#allocation44_spill]] }
  0xcb   :  { %s4765_s20 = scalar_lea.hbm %s5846_s2, 2048 }
  0xcc   :  { %p4766_p2 = scmp.ne.s32.totalorder %s5846_s2, %s4765_s20  ;;  %p4769_p3 = scmp.lt.u32.totalorder %s4765_s20, %s5846_s2 }
  0xce   :  { %p4771_p4 = pnand %p4769_p3, %p4766_p2 }
  0xd0   :  { %4774 = shalt.err (!%p4771_p4)
}
  0xd1   :  { %s4775_s17 = scalar_lea.vmem %s5234_s30, 2048  ;;  %p4780_p6 = scmp.lt.s32.totalorder %s5234_s30, %s5234_s30 }
  0xd2   :  { %p4776_p5 = scmp.ne.s32.totalorder %s5234_s30, %s4775_s17  ;;  %p4781_p7 = scmp.lt.s32.totalorder %s4775_s17, %s4775_s17 }
  0xd4   :  { %p4782_p8 = por %p4781_p7, %p4780_p6 }
  0xd6   :  { %p4783_p9 = pnand %p4782_p8, %p4776_p5 }
  0xd8   :  { %4786 = shalt.err (!%p4783_p9)
}
  0xd9   :  { %99 = dma.hbm_to_vmem [thread:$0]  %s5846_s2, 2048, %s5234_s30, [#allocation9], %s4939_s4, %s4939_s4, %s4940_s1  }
  0xda   :  { %s4949_s28 = smov [#allocation13]   ;;  %s5847_s8 = sld [smem:[#allocation46_spill]] }
  0xdb   :  { %s117_s26 = sshll.u32 %s4949_s28, 4  ;;  %s118_s26 = int_to_ptr.vmem [resolvable:$true] %s117_s26 }
  0xe0   :  { %s4787_s7 = scalar_lea.hbm %s5847_s8, 4096 }
  0xe1   :  { %p4788_p10 = scmp.ne.s32.totalorder %s5847_s8, %s4787_s7  ;;  %p4791_p11 = scmp.lt.u32.totalorder %s4787_s7, %s5847_s8 }
  0xe3   :  { %p4793_p12 = pnand %p4791_p11, %p4788_p10 }
  0xe5   :  { %4796 = shalt.err (!%p4793_p12)
}
  0xe6   :  { %s4797_s20 = scalar_lea.vmem %s118_s26, 4096  ;;  %p4802_p0 = scmp.lt.s32.totalorder %s118_s26, %s118_s26 }
  0xe7   :  { %p4798_p13 = scmp.ne.s32.totalorder %s118_s26, %s4797_s20  ;;  %p4803_p1 = scmp.lt.s32.totalorder %s4797_s20, %s4797_s20 }
  0xe9   :  { %p4804_p2 = por %p4803_p1, %p4802_p0 }
  0xeb   :  { %p4805_p3 = pnand %p4804_p2, %p4798_p13 }
  0xed   :  { %4808 = shalt.err (!%p4805_p3)
}
  0xee   :  { %s4950_s30 = smov 256   ;;  %s4951_s2 = smov 16  }
  0xef   :  { %123 = dma.hbm_to_vmem [thread:$0]  %s5847_s8, 4096, %s118_s26, [#allocation12], %s4950_s30, %s4950_s30, %s4951_s2  }
  0xf0   :  { %s4952_s27 = smov [#allocation16]   ;;  %s4953_s17 = smov [#allocation19]  }
  0xf1   :  { %s147_s25 = sshll.u32 %s4952_s27, 4  ;;  %s173_s3 = sshll.u32 %s4953_s17, 4  ;;  %s148_s25 = int_to_ptr.vmem [resolvable:$true] %s147_s25  ;;  %s174_s3 = int_to_ptr.vmem [resolvable:$true] %s173_s3 }
  0xf2   :  { %s4809_s29 = scalar_lea.hbm %s5806_s12, 2048 }
  0xf3   :  { %p4810_p4 = scmp.ne.s32.totalorder %s5806_s12, %s4809_s29  ;;  %p4813_p5 = scmp.lt.u32.totalorder %s4809_s29, %s5806_s12 }
  0xf5   :  { %p4815_p6 = pnand %p4813_p5, %p4810_p4 }
  0xf7   :  { %4818 = shalt.err (!%p4815_p6)
}
  0xf8   :  { %s4819_s26 = scalar_lea.vmem %s148_s25, 2048  ;;  %p4824_p8 = scmp.lt.s32.totalorder %s148_s25, %s148_s25 }
  0xf9   :  { %p4820_p7 = scmp.ne.s32.totalorder %s148_s25, %s4819_s26  ;;  %p4825_p9 = scmp.lt.s32.totalorder %s4819_s26, %s4819_s26 }
  0xfb   :  { %p4826_p10 = por %p4825_p9, %p4824_p8 }
  0xfd   :  { %p4827_p11 = pnand %p4826_p10, %p4820_p7 }
  0xff   :  { %4830 = shalt.err (!%p4827_p11)
}
 0x100   :  { %153 = dma.hbm_to_vmem [thread:$0]  %s5806_s12, 2048, %s148_s25, [#allocation15], %s4939_s4, %s4939_s4, %s4940_s1  }
 0x101   :  { %s4831_s30 = scalar_lea.hbm %s5809_s15, 2048 }
 0x102   :  { %p4832_p12 = scmp.ne.s32.totalorder %s5809_s15, %s4831_s30  ;;  %p4835_p13 = scmp.lt.u32.totalorder %s4831_s30, %s5809_s15 }
 0x104   :  { %p4837_p0 = pnand %p4835_p13, %p4832_p12 }
 0x106   :  { %4840 = shalt.err (!%p4837_p0)
}
 0x107   :  { %s4841_s17 = scalar_lea.vmem %s174_s3, 2048  ;;  %p4846_p2 = scmp.lt.s32.totalorder %s174_s3, %s174_s3 }
 0x108   :  { %p4842_p1 = scmp.ne.s32.totalorder %s174_s3, %s4841_s17  ;;  %p4847_p3 = scmp.lt.s32.totalorder %s4841_s17, %s4841_s17 }
 0x10a   :  { %p4848_p4 = por %p4847_p3, %p4846_p2 }
 0x10c   :  { %p4849_p5 = pnand %p4848_p4, %p4842_p1 }
 0x10e   :  { %4852 = shalt.err (!%p4849_p5)
}
 0x10f   :  { %179 = dma.hbm_to_vmem [thread:$0]  %s5809_s15, 2048, %s174_s3, [#allocation18], %s4939_s4, %s4939_s4, %s4940_s1  }
 0x110   :  { %s4954_s0 = smov [#allocation22]   ;;  %s4955_s29 = smov [#allocation25]  }
 0x111   :  { %s199_s28 = sshll.u32 %s4954_s0, 4  ;;  %s227_s14 = sshll.u32 %s4955_s29, 4  ;;  %s200_s28 = int_to_ptr.vmem [resolvable:$true] %s199_s28  ;;  %s228_s14 = int_to_ptr.vmem [resolvable:$true] %s227_s14 }
 0x112   :  { %s4853_s21 = scalar_lea.hbm %s5812_s18, 2048 }
 0x113   :  { %p4854_p6 = scmp.ne.s32.totalorder %s5812_s18, %s4853_s21  ;;  %p4857_p7 = scmp.lt.u32.totalorder %s4853_s21, %s5812_s18 }
 0x115   :  { %p4859_p8 = pnand %p4857_p7, %p4854_p6 }
 0x117   :  { %4862 = shalt.err (!%p4859_p8)
}
 0x118   :  { %s4863_s15 = scalar_lea.vmem %s200_s28, 2048  ;;  %p4868_p10 = scmp.lt.s32.totalorder %s200_s28, %s200_s28 }
 0x119   :  { %p4864_p9 = scmp.ne.s32.totalorder %s200_s28, %s4863_s15  ;;  %p4869_p11 = scmp.lt.s32.totalorder %s4863_s15, %s4863_s15 }
 0x11b   :  { %p4870_p12 = por %p4869_p11, %p4868_p10 }
 0x11d   :  { %p4871_p13 = pnand %p4870_p12, %p4864_p9 }
 0x11f   :  { %4874 = shalt.err (!%p4871_p13)
}
 0x120   :  { %205 = dma.hbm_to_vmem [thread:$0]  %s5812_s18, 2048, %s200_s28, [#allocation21], %s4939_s4, %s4939_s4, %s4940_s1  }
 0x121   :  { %s4875_s23 = scalar_lea.hbm %s5816_s22, 2048 }
 0x122   :  { %p4876_p0 = scmp.ne.s32.totalorder %s5816_s22, %s4875_s23  ;;  %p4879_p1 = scmp.lt.u32.totalorder %s4875_s23, %s5816_s22 }
 0x124   :  { %p4881_p2 = pnand %p4879_p1, %p4876_p0 }
 0x126   :  { %4884 = shalt.err (!%p4881_p2)
}
 0x127   :  { %s4885_s25 = scalar_lea.vmem %s228_s14, 2048  ;;  %p4890_p4 = scmp.lt.s32.totalorder %s228_s14, %s228_s14 }
 0x128   :  { %p4886_p3 = scmp.ne.s32.totalorder %s228_s14, %s4885_s25  ;;  %p4891_p5 = scmp.lt.s32.totalorder %s4885_s25, %s4885_s25 }
 0x12a   :  { %p4892_p6 = por %p4891_p5, %p4890_p4 }
 0x12c   :  { %p4893_p7 = pnand %p4892_p6, %p4886_p3 }
 0x12e   :  { %4896 = shalt.err (!%p4893_p7)
}
 0x12f   :  { %233 = dma.hbm_to_vmem [thread:$0]  %s5816_s22, 2048, %s228_s14, [#allocation24], %s4939_s4, %s4939_s4, %s4940_s1  }
 0x130   :  { %4919 = dma.done.wait [#allocation3], 2048  }
 0x131   :  { %4920 = vsyncadd [#allocation3], 4294965248 }
 0x132   :  { %4921 = dma.done.wait [#allocation6], 4096  }
 0x133   :  { %4922 = vsyncadd [#allocation6], 4294963200 }
 0x134   :  { %4923 = dma.done.wait [#allocation9], 4096  }
 0x135   :  { %4924 = vsyncadd [#allocation9], 4294963200 }
 0x136   :  { %4925 = dma.done.wait [#allocation12], 6144  }
 0x137   :  { %4926 = vsyncadd [#allocation12], 4294961152 }
 0x138   :  { %4927 = dma.done.wait [#allocation15], 4096  }
 0x139   :  { %4928 = vsyncadd [#allocation15], 4294963200 }
 0x13a   :  { %4929 = dma.done.wait [#allocation18], 4096  }
 0x13b   :  { %4930 = vsyncadd [#allocation18], 4294963200 }
 0x13c   :  { %4931 = dma.done.wait [#allocation21], 4096  }
 0x13d   :  { %4932 = vsyncadd [#allocation21], 4294963200 }
 0x13e   :  { %4933 = dma.done.wait [#allocation24], 4096  }
 0x13f   :  { %4934 = vsyncadd [#allocation24], 4294963200  ;;  %v5827_v0 = vmov 0.0   ;;  %v298_v1 = vld [vmem:[#allocation13 + $0x8] sm:$0xff]  ;;  %v300_v2 = vld [vmem:[#allocation13 + $0x18] sm:$0xff]  ;;  %s5851_s7 = sld [smem:[#allocation47_spill]] }
 0x140   :  { %393 = vmatprep.mubr.f32.mxu0 %v5827_v0  ;;  %v297_v3 = vld [vmem:[#allocation13] sm:$0xff]  ;;  %v3989_v4 = vpack.c.bf16 %v300_v2, %v298_v1  ;;  %v299_v5 = vld [vmem:[#allocation13 + $0x10] sm:$0xff]  ;;  %v302_v6 = vld [vmem:[#allocation13 + $0x28] sm:$0xff]  ;;  %vm4958_vm0 = vmmov 0   ;;  %s5856_s26 = sld [smem:[#allocation43_spill]]  ;;  %s5857_s15 = sld [smem:[#allocation48_spill]] }
 0x141   :  { %v304_v7 = vld [vmem:[#allocation13 + $0x38] sm:$0xff]  ;;  %v3991_v8 = vpack.c.bf16 %v299_v5, %v297_v3  ;;  %v301_v10 = vld [vmem:[#allocation13 + $0x20] sm:$0xff]  ;;  %v303_v11 = vld [vmem:[#allocation13 + $0x30] sm:$0xff]  ;;  %s5858_s30 = sld [smem:[#allocation49_spill]]  ;;  %s4960_s2 = smov [#allocation26]  }
 0x142   :  { %v3993_v9 = vpack.c.bf16 %v304_v7, %v302_v6  ;;  %v306_v12 = vld [vmem:[#allocation13 + $0x48] sm:$0xff]  ;;  %3990 = vmatprep.subr.bf16.mxu0 %v3989_v4  ;;  %v308_v13 = vld [vmem:[#allocation13 + $0x58] sm:$0xff]  ;;  %v3995_v14 = vpack.c.bf16 %v303_v11, %v301_v10  ;;  %v305_v16 = vld [vmem:[#allocation13 + $0x40] sm:$0xff]  ;;  %s2838_s23 = sshll.u32 %s4960_s2, 4  ;;  %s2839_s23 = int_to_ptr.vmem [resolvable:$true] %s2838_s23 }
 0x143   :  { %3992 = vmatpush1.bf16.msra.mxu0 %v3991_v8  ;;  %v3997_v15 = vpack.c.bf16 %v308_v13, %v306_v12  ;;  %v307_v17 = vld [vmem:[#allocation13 + $0x50] sm:$0xff]  ;;  %v310_v18 = vld [vmem:[#allocation13 + $0x68] sm:$0xff]  ;;  %v312_v19 = vld [vmem:[#allocation13 + $0x78] sm:$0xff]  ;;  %s4897_s24 = scalar_lea.vmem %s2839_s23, 128  ;;  %p4902_p9 = scmp.lt.s32.totalorder %s2839_s23, %s2839_s23 }
 0x144   :  { %3994 = vmatprep.subr.bf16.mxu0 %v3993_v9  ;;  %v3999_v20 = vpack.c.bf16 %v307_v17, %v305_v16  ;;  %v4001_v21 = vpack.c.bf16 %v312_v19, %v310_v18  ;;  %v309_v22 = vld [vmem:[#allocation13 + $0x60] sm:$0xff]  ;;  %v311_v23 = vld [vmem:[#allocation13 + $0x70] sm:$0xff]  ;;  %v314_v24 = vld [vmem:[#allocation13 + $0x88] sm:$0xff]  ;;  %p4898_p8 = scmp.ne.s32.totalorder %s2839_s23, %s4897_s24  ;;  %p4903_p10 = scmp.lt.s32.totalorder %s4897_s24, %s4897_s24 }
 0x145   :  { %v316_v25 = vld [vmem:[#allocation13 + $0x98] sm:$0xff]  ;;  %v4003_v26 = vpack.c.bf16 %v311_v23, %v309_v22  ;;  %v313_v28 = vld [vmem:[#allocation13 + $0x80] sm:$0xff]  ;;  %v315_v29 = vld [vmem:[#allocation13 + $0x90] sm:$0xff] }
 0x146   :  { %v4005_v27 = vpack.c.bf16 %v316_v25, %v314_v24  ;;  %v318_v30 = vld [vmem:[#allocation13 + $0xa8] sm:$0xff]  ;;  %v320_v31 = vld [vmem:[#allocation13 + $0xb8] sm:$0xff]  ;;  %v4007_v32 = vpack.c.bf16 %v315_v29, %v313_v28  ;;  %v317_v34 = vld [vmem:[#allocation13 + $0xa0] sm:$0xff]  ;;  %p4904_p11 = por %p4903_p10, %p4902_p9 }
 0x147   :  { %3996 = vmatpush1.bf16.msra.mxu0 %v3995_v14  ;;  %v4009_v33 = vpack.c.bf16 %v320_v31, %v318_v30  ;;  %v319_v35 = vld [vmem:[#allocation13 + $0xb0] sm:$0xff]  ;;  %v322_v36 = vld [vmem:[#allocation13 + $0xc8] sm:$0xff]  ;;  %v324_v37 = vld [vmem:[#allocation13 + $0xd8] sm:$0xff] }
 0x148   :  { %3998 = vmatprep.subr.bf16.mxu0 %v3997_v15  ;;  %v4011_v38 = vpack.c.bf16 %v319_v35, %v317_v34  ;;  %v4013_v39 = vpack.c.bf16 %v324_v37, %v322_v36  ;;  %v321_v40 = vld [vmem:[#allocation13 + $0xc0] sm:$0xff]  ;;  %v323_v41 = vld [vmem:[#allocation13 + $0xd0] sm:$0xff]  ;;  %v326_v42 = vld [vmem:[#allocation13 + $0xe8] sm:$0xff]  ;;  %p4905_p12 = pnand %p4904_p11, %p4898_p8 }
 0x149   :  { %v328_v43 = vld [vmem:[#allocation13 + $0xf8] sm:$0xff]  ;;  %v4015_v44 = vpack.c.bf16 %v323_v41, %v321_v40  ;;  %v325_v46 = vld [vmem:[#allocation13 + $0xe0] sm:$0xff]  ;;  %v327_v47 = vld [vmem:[#allocation13 + $0xf0] sm:$0xff] }
 0x14a   :  { %v4017_v45 = vpack.c.bf16 %v328_v43, %v326_v42  ;;  %v4019_v48 = vpack.c.bf16 %v327_v47, %v325_v46  ;;  %v281_v49 = vld [vmem:[#allocation10] sm:$0xff]  ;;  %v282_v50 = vld [vmem:[#allocation10 + $0x8] sm:$0xff]  ;;  %v283_v51 = vld [vmem:[#allocation10 + $0x10] sm:$0xff] }
 0x14b   :  { %4000 = vmatpush1.bf16.msra.mxu0 %v3999_v20  ;;  %v284_v52 = vld [vmem:[#allocation10 + $0x18] sm:$0xff]  ;;  %v285_v53 = vld [vmem:[#allocation10 + $0x20] sm:$0xff]  ;;  %v286_v54 = vld [vmem:[#allocation10 + $0x28] sm:$0xff] }
 0x14c   :  { %4002 = vmatprep.subr.bf16.mxu0 %v4001_v21  ;;  %v287_v55 = vld [vmem:[#allocation10 + $0x30] sm:$0xff]  ;;  %v288_v56 = vld [vmem:[#allocation10 + $0x38] sm:$0xff]  ;;  %v289_v57 = vld [vmem:[#allocation10 + $0x40] sm:$0xff] }
 0x14d   :  { %v290_v58 = vld [vmem:[#allocation10 + $0x48] sm:$0xff]  ;;  %v291_v59 = vld [vmem:[#allocation10 + $0x50] sm:$0xff]  ;;  %v292_v60 = vld [vmem:[#allocation10 + $0x58] sm:$0xff] }
 0x14e   :  { %v293_v61 = vld [vmem:[#allocation10 + $0x60] sm:$0xff]  ;;  %v294_v62 = vld [vmem:[#allocation10 + $0x68] sm:$0xff]  ;;  %v295_v63 = vld [vmem:[#allocation10 + $0x70] sm:$0xff] }
 0x14f   :  { %4004 = vmatpush1.bf16.msra.mxu0 %v4003_v26  ;;  %v296_v1 = vld [vmem:[#allocation10 + $0x78] sm:$0xff]  ;;  %v513_v2 = vld [vmem:[#allocation2] sm:$0xff] }
 0x150   :  { %4006 = vmatprep.subr.bf16.mxu0 %v4005_v27  ;;  %3300 = vmatprep.mubr.f32.mxu1 %v513_v2  ;;  %v5359_v3 = vld [vmem:[#allocation7] sm:$0xff] }
 0x151   :  { %v5365_v6 = vld [vmem:[%s5803_s9] ss:$0 sm:$0xff] }
 0x153   :  { %4008 = vmatpush1.bf16.msra.mxu0 %v4007_v32 }
 0x154   :  { %4010 = vmatprep.subr.bf16.mxu0 %v4009_v33 }
 0x157   :  { %4012 = vmatpush1.bf16.msra.mxu0 %v4011_v38 }
 0x158   :  { %4014 = vmatprep.subr.bf16.mxu0 %v4013_v39 }
 0x15b   :  { %4016 = vmatpush1.bf16.msra.mxu0 %v4015_v44 }
 0x15c   :  { %4018 = vmatprep.subr.bf16.mxu0 %v4017_v45 }
 0x15f   :  { %4020 = vmatpush1.bf16.msra.mxu0 %v4019_v48 }
 0x162   :  { %394 = vmatmul.mubr.f32.vlgmr.msra.gmra.mrb[0].mxu0 %v281_v49 }
 0x163   :  { %399 = vmatprep.mubr.f32.mxu0 %v5827_v0 }
 0x166   :  { %400 = vmatmul.mubr.f32.gmra.mrb[2].mxu0 %v282_v50 }
 0x167   :  { %405 = vmatprep.mubr.f32.mxu0 %v5827_v0 }
 0x16a   :  { %406 = vmatmul.mubr.f32.gmra.mrb[4].mxu0 %v283_v51 }
 0x16b   :  { %411 = vmatprep.mubr.f32.mxu0 %v5827_v0 }
 0x16e   :  { %412 = vmatmul.mubr.f32.gmra.mrb[6].mxu0 %v284_v52 }
 0x16f   :  { %417 = vmatprep.mubr.f32.mxu0 %v5827_v0 }
 0x172   :  { %418 = vmatmul.mubr.f32.gmra.mrb[8].mxu0 %v285_v53 }
 0x173   :  { %423 = vmatprep.mubr.f32.mxu0 %v5827_v0 }
 0x176   :  { %424 = vmatmul.mubr.f32.gmra.mrb[10].mxu0 %v286_v54 }
 0x177   :  { %429 = vmatprep.mubr.f32.mxu0 %v5827_v0 }
 0x17a   :  { %430 = vmatmul.mubr.f32.gmra.mrb[12].mxu0 %v287_v55 }
 0x17b   :  { %435 = vmatprep.mubr.f32.mxu0 %v5827_v0 }
 0x17e   :  { %436 = vmatmul.mubr.f32.gmra.mrb[14].mxu0 %v288_v56 }
 0x17f   :  { %441 = vmatprep.mubr.f32.mxu0 %v5827_v0 }
 0x182   :  { %442 = vmatmul.mubr.f32.gmra.mrb[16].mxu0 %v289_v57 }
 0x183   :  { %447 = vmatprep.mubr.f32.mxu0 %v5827_v0 }
 0x186   :  { %448 = vmatmul.mubr.f32.gmra.mrb[18].mxu0 %v290_v58 }
 0x187   :  { %453 = vmatprep.mubr.f32.mxu0 %v5827_v0 }
 0x18a   :  { %454 = vmatmul.mubr.f32.gmra.mrb[20].mxu0 %v291_v59 }
 0x18b   :  { %459 = vmatprep.mubr.f32.mxu0 %v5827_v0 }
 0x18e   :  { %460 = vmatmul.mubr.f32.gmra.mrb[22].mxu0 %v292_v60 }
 0x18f   :  { %465 = vmatprep.mubr.f32.mxu0 %v5827_v0 }
 0x192   :  { %466 = vmatmul.mubr.f32.gmra.mrb[24].mxu0 %v293_v61 }
 0x193   :  { %471 = vmatprep.mubr.f32.mxu0 %v5827_v0 }
 0x196   :  { %472 = vmatmul.mubr.f32.gmra.mrb[26].mxu0 %v294_v62 }
 0x197   :  { %477 = vmatprep.mubr.f32.mxu0 %v5827_v0 }
 0x19a   :  { %478 = vmatmul.mubr.f32.gmra.mrb[28].mxu0 %v295_v63 }
 0x19b   :  { %483 = vmatprep.mubr.f32.mxu0 %v5827_v0 }
 0x19e   :  { %484 = vmatmul.mubr.f32.gmra.mrb[30].mxu0 %v296_v1 }
 0x19f   :  { %3412 = vmatprep.mubr.f32.mxu0 %v5359_v3 }
 0x235   :  { %v395_v4 = vpop.f32.mrb[0].mxu0 }
 0x236   :  { %v397_v5 = vpop.f32.mrb[1].mxu0 }
 0x237   :  { %v497_v10 = vadd.f32 %v5365_v6, %v397_v5 }
 0x239   :  { %v401_v7 = vpop.f32.mrb[2].mxu0 }
 0x23a   :  { %v4021_v8 = vpack.c.bf16 %v401_v7, %v395_v4  ;;  %v403_v9 = vpop.f32.mrb[3].mxu0 }
 0x23b   :  { %v498_v11 = vadd.f32 %v5365_v6, %v403_v9  ;;  %v515_v9 = vld [vmem:[#allocation2 + $0x10] sm:$0xff] }
 0x23c   :  { %4022 = vmatprep.subr.bf16.mxu1 %v4021_v8 }
 0x23d   :  { %v5369_v12 = vpack.c.bf16 %v498_v11, %v497_v10  ;;  %v407_v13 = vpop.f32.mrb[4].mxu0  ;;  %4024 = vmatpush3.bf16.msra.mxu1 %v4021_v8  ;;  %v514_v8 = vld [vmem:[#allocation2 + $0x8] sm:$0xff]  ;;  %v516_v10 = vld [vmem:[#allocation2 + $0x18] sm:$0xff] }
 0x23e   :  { %v409_v14 = vpop.f32.mrb[5].mxu0  ;;  %v5418_v11 = vld [vmem:[#allocation7 + $0x8] sm:$0xff] }
 0x23f   :  { %4086 = vmatprep.subr.bf16.mxu0 %v5369_v12  ;;  %v499_v18 = vadd.f32 %v5365_v6, %v409_v14  ;;  %v518_v14 = vld [vmem:[#allocation2 + $0x28] sm:$0xff] }
 0x240   :  { %4088 = vmatpush3.bf16.msra.mxu0 %v5369_v12 }
 0x241   :  { %v413_v15 = vpop.f32.mrb[6].mxu0 }
 0x242   :  { %v4025_v16 = vpack.c.bf16 %v413_v15, %v407_v13  ;;  %v415_v17 = vpop.f32.mrb[7].mxu0  ;;  %v5420_v13 = vld [vmem:[#allocation7 + $0x10] sm:$0xff]  ;;  %v5426_v15 = vld [vmem:[#allocation7 + $0x18] sm:$0xff] }
 0x243   :  { %v500_v19 = vadd.f32 %v5365_v6, %v415_v17  ;;  %v520_v17 = vld [vmem:[#allocation2 + $0x38] sm:$0xff] }
 0x244   :  { %4026 = vmatprep.subr.bf16.mxu1 %v4025_v16 }
 0x245   :  { %v5375_v20 = vpack.c.bf16 %v500_v19, %v499_v18  ;;  %v419_v21 = vpop.f32.mrb[8].mxu0  ;;  %4028 = vmatpush3.bf16.msra.mxu1 %v4025_v16  ;;  %v5428_v16 = vld [vmem:[#allocation7 + $0x20] sm:$0xff]  ;;  %v5434_v19 = vld [vmem:[#allocation7 + $0x28] sm:$0xff] }
 0x246   :  { %v421_v22 = vpop.f32.mrb[9].mxu0  ;;  %v521_v18 = vld [vmem:[#allocation2 + $0x40] sm:$0xff] }
 0x247   :  { %4090 = vmatprep.subr.bf16.mxu0 %v5375_v20  ;;  %v501_v26 = vadd.f32 %v5365_v6, %v421_v22  ;;  %v523_v22 = vld [vmem:[#allocation2 + $0x50] sm:$0xff] }
 0x248   :  { %4092 = vmatpush3.bf16.msra.mxu0 %v5375_v20 }
 0x249   :  { %v425_v23 = vpop.f32.mrb[10].mxu0 }
 0x24a   :  { %v4029_v24 = vpack.c.bf16 %v425_v23, %v419_v21  ;;  %v427_v25 = vpop.f32.mrb[11].mxu0  ;;  %v522_v21 = vld [vmem:[#allocation2 + $0x48] sm:$0xff]  ;;  %v5442_v23 = vld [vmem:[#allocation7 + $0x38] sm:$0xff] }
 0x24b   :  { %v502_v27 = vadd.f32 %v5365_v6, %v427_v25  ;;  %v524_v25 = vld [vmem:[#allocation2 + $0x58] sm:$0xff] }
 0x24c   :  { %4030 = vmatprep.subr.bf16.mxu1 %v4029_v24 }
 0x24d   :  { %v5381_v28 = vpack.c.bf16 %v502_v27, %v501_v26  ;;  %v431_v29 = vpop.f32.mrb[12].mxu0  ;;  %4032 = vmatpush3.bf16.msra.mxu1 %v4029_v24  ;;  %v5444_v24 = vld [vmem:[#allocation7 + $0x40] sm:$0xff]  ;;  %v5450_v27 = vld [vmem:[#allocation7 + $0x48] sm:$0xff] }
 0x24e   :  { %v433_v30 = vpop.f32.mrb[13].mxu0  ;;  %v525_v26 = vld [vmem:[#allocation2 + $0x60] sm:$0xff] }
 0x24f   :  { %4094 = vmatprep.subr.bf16.mxu0 %v5381_v28  ;;  %v503_v34 = vadd.f32 %v5365_v6, %v433_v30  ;;  %v527_v30 = vld [vmem:[#allocation2 + $0x70] sm:$0xff] }
 0x250   :  { %4096 = vmatpush3.bf16.msra.mxu0 %v5381_v28 }
 0x251   :  { %v437_v31 = vpop.f32.mrb[14].mxu0 }
 0x252   :  { %v4033_v32 = vpack.c.bf16 %v437_v31, %v431_v29  ;;  %v439_v33 = vpop.f32.mrb[15].mxu0  ;;  %v526_v29 = vld [vmem:[#allocation2 + $0x68] sm:$0xff]  ;;  %v5458_v31 = vld [vmem:[#allocation7 + $0x58] sm:$0xff] }
 0x253   :  { %v504_v35 = vadd.f32 %v5365_v6, %v439_v33  ;;  %v1036_v33 = vld [vmem:[#allocation11 + $0x8] sm:$0xff] }
 0x254   :  { %4034 = vmatprep.subr.bf16.mxu1 %v4033_v32 }
 0x255   :  { %v5387_v36 = vpack.c.bf16 %v504_v35, %v503_v34  ;;  %v443_v37 = vpop.f32.mrb[16].mxu0  ;;  %4036 = vmatpush3.bf16.msra.mxu1 %v4033_v32  ;;  %v1035_v32 = vld [vmem:[#allocation11] sm:$0xff]  ;;  %v528_v35 = vld [vmem:[#allocation2 + $0x78] sm:$0xff] }
 0x256   :  { %v445_v38 = vpop.f32.mrb[17].mxu0  ;;  %v5460_v34 = vld [vmem:[#allocation7 + $0x60] sm:$0xff] }
 0x257   :  { %4098 = vmatprep.subr.bf16.mxu0 %v5387_v36  ;;  %v505_v42 = vadd.f32 %v5365_v6, %v445_v38  ;;  %v5468_v38 = vld [vmem:[#allocation7 + $0x68] sm:$0xff] }
 0x258   :  { %4100 = vmatpush3.bf16.msra.mxu0 %v5387_v36 }
 0x259   :  { %v449_v39 = vpop.f32.mrb[18].mxu0 }
 0x25a   :  { %v4037_v40 = vpack.c.bf16 %v449_v39, %v443_v37  ;;  %v451_v41 = vpop.f32.mrb[19].mxu0  ;;  %v4117_v37 = vpack.c.bf16 %v1036_v33, %v1035_v32  ;;  %v1037_v39 = vld [vmem:[#allocation11 + $0x10] sm:$0xff] }
 0x25b   :  { %v506_v43 = vadd.f32 %v5365_v6, %v451_v41  ;;  %v5470_v41 = vld [vmem:[#allocation7 + $0x70] sm:$0xff] }
 0x25c   :  { %4038 = vmatprep.subr.bf16.mxu1 %v4037_v40 }
 0x25d   :  { %v5393_v44 = vpack.c.bf16 %v506_v43, %v505_v42  ;;  %v455_v45 = vpop.f32.mrb[20].mxu0  ;;  %4040 = vmatpush3.bf16.msra.mxu1 %v4037_v40  ;;  %v1038_v40 = vld [vmem:[#allocation11 + $0x18] sm:$0xff]  ;;  %v5476_v42 = vld [vmem:[#allocation5 + $0x8] sm:$0xff]  ;;  %v5478_v43 = vld [vmem:[#allocation5 + $0x10] sm:$0xff] }
 0x25e   :  { %v457_v46 = vpop.f32.mrb[21].mxu0 }
 0x25f   :  { %4102 = vmatprep.subr.bf16.mxu0 %v5393_v44  ;;  %v507_v50 = vadd.f32 %v5365_v6, %v457_v46  ;;  %v1039_v46 = vld [vmem:[#allocation11 + $0x20] sm:$0xff] }
 0x260   :  { %4104 = vmatpush3.bf16.msra.mxu0 %v5393_v44 }
 0x261   :  { %v461_v47 = vpop.f32.mrb[22].mxu0 }
 0x262   :  { %v4041_v48 = vpack.c.bf16 %v461_v47, %v455_v45  ;;  %v463_v49 = vpop.f32.mrb[23].mxu0  ;;  %v5480_v45 = vld [vmem:[#allocation7 + $0x78] sm:$0xff]  ;;  %v1040_v47 = vld [vmem:[#allocation11 + $0x28] sm:$0xff] }
 0x263   :  { %v508_v51 = vadd.f32 %v5365_v6, %v463_v49  ;;  %v5487_v49 = vld [vmem:[#allocation5 + $0x20] sm:$0xff] }
 0x264   :  { %4042 = vmatprep.subr.bf16.mxu1 %v4041_v48 }
 0x265   :  { %v5399_v52 = vpack.c.bf16 %v508_v51, %v507_v50  ;;  %v467_v53 = vpop.f32.mrb[24].mxu0  ;;  %4044 = vmatpush3.bf16.msra.mxu1 %v4041_v48  ;;  %v5485_v48 = vld [vmem:[#allocation5 + $0x18] sm:$0xff]  ;;  %v4125_v50 = vpack.c.bf16 %v1040_v47, %v1039_v46  ;;  %v1041_v51 = vld [vmem:[#allocation11 + $0x30] sm:$0xff] }
 0x266   :  { %v469_v54 = vpop.f32.mrb[25].mxu0  ;;  %v1207_v46 = vld [vmem:[#allocation14 + $0x58] sm:$0xff] }
 0x267   :  { %4106 = vmatprep.subr.bf16.mxu0 %v5399_v52  ;;  %v509_v58 = vadd.f32 %v5365_v6, %v469_v54  ;;  %v703_v54 = vld [vmem:[#allocation5 + $0x30] sm:$0xff] }
 0x268   :  { %4108 = vmatpush3.bf16.msra.mxu0 %v5399_v52 }
 0x269   :  { %v473_v55 = vpop.f32.mrb[26].mxu0 }
 0x26a   :  { %v4045_v56 = vpack.c.bf16 %v473_v55, %v467_v53  ;;  %v475_v57 = vpop.f32.mrb[27].mxu0  ;;  %v702_v53 = vld [vmem:[#allocation5 + $0x28] sm:$0xff] }
 0x26b   :  { %v510_v59 = vadd.f32 %v5365_v6, %v475_v57  ;;  %v1044_v57 = vld [vmem:[#allocation11 + $0x48] sm:$0xff] }
 0x26c   :  { %4046 = vmatprep.subr.bf16.mxu1 %v4045_v56 }
 0x26d   :  { %v5405_v60 = vpack.c.bf16 %v510_v59, %v509_v58  ;;  %v479_v61 = vpop.f32.mrb[28].mxu0  ;;  %4048 = vmatpush3.bf16.msra.mxu1 %v4045_v56  ;;  %v1043_v56 = vld [vmem:[#allocation11 + $0x40] sm:$0xff]  ;;  %v704_v58 = vld [vmem:[#allocation5 + $0x38] sm:$0xff] }
 0x26e   :  { %v481_v62 = vpop.f32.mrb[29].mxu0  ;;  %v705_v59 = vld [vmem:[#allocation5 + $0x40] sm:$0xff] }
 0x26f   :  { %4110 = vmatprep.subr.bf16.mxu0 %v5405_v60  ;;  %v511_v4 = vadd.f32 %v5365_v6, %v481_v62  ;;  %v1046_v62 = vld [vmem:[#allocation11 + $0x58] sm:$0xff] }
 0x270   :  { %4112 = vmatpush3.bf16.msra.mxu0 %v5405_v60 }
 0x271   :  { %v485_v63 = vpop.f32.mrb[30].mxu0 }
 0x272   :  { %v4049_v1 = vpack.c.bf16 %v485_v63, %v479_v61  ;;  %v487_v2 = vpop.f32.mrb[31].mxu0  ;;  %v1045_v61 = vld [vmem:[#allocation11 + $0x50] sm:$0xff]  ;;  %v706_v63 = vld [vmem:[#allocation5 + $0x48] sm:$0xff] }
 0x273   :  { %v512_v5 = vadd.f32 %v5365_v6, %v487_v2  ;;  %v517_v6 = vld [vmem:[#allocation2 + $0x20] sm:$0xff]  ;;  %v4137_v2 = vpack.c.bf16 %v1046_v62, %v1045_v61  ;;  %v1028_v32 = vsub.f32 %v5450_v27, %v706_v63 }
 0x274   :  { %4050 = vmatprep.subr.bf16.mxu1 %v4049_v1 }
 0x275   :  { %v5411_v7 = vpack.c.bf16 %v512_v5, %v511_v4  ;;  %4052 = vmatpush3.bf16.msra.mxu1 %v4049_v1  ;;  %v707_v1 = vld [vmem:[#allocation5 + $0x50] sm:$0xff]  ;;  %v1047_v4 = vld [vmem:[#allocation11 + $0x60] sm:$0xff]  ;;  %v1048_v5 = vld [vmem:[#allocation11 + $0x68] sm:$0xff] }
 0x276   :  { %4054 = vmatprep.subr.bf16.mxu1 %v5369_v12 }
 0x277   :  { %4114 = vmatprep.subr.bf16.mxu0 %v5411_v7 }
 0x278   :  { %3301 = vmatmul.mubr.f32.vlgmr.msra.gmra.mrb[0].mxu1 %v514_v8  ;;  %4116 = vmatpush3.bf16.msra.mxu0 %v5411_v7  ;;  %v709_v8 = vld [vmem:[#allocation5 + $0x60] sm:$0xff] }
 0x279   :  { %4056 = vmatpush3.bf16.msra.mxu1 %v5369_v12  ;;  %3303 = vmatprep.mubr.f32.mxu1 %v515_v9  ;;  %v519_v12 = vld [vmem:[#allocation2 + $0x30] sm:$0xff]  ;;  %v4141_v9 = vpack.c.bf16 %v1048_v5, %v1047_v4 }
 0x27a   :  { %4058 = vmatprep.subr.bf16.mxu1 %v5375_v20 }
 0x27b   :  { %3413 = vmatmul.mubr.f32.vlgmr.msra.gmra.mrb[32].mxu0 %v5418_v11 }
 0x27c   :  { %3304 = vmatmul.mubr.f32.gmra.mrb[2].mxu1 %v516_v10  ;;  %3415 = vmatprep.mubr.f32.mxu0 %v5420_v13  ;;  %v1049_v10 = vld [vmem:[#allocation11 + $0x70] sm:$0xff] }
 0x27d   :  { %4060 = vmatpush3.bf16.msra.mxu1 %v5375_v20  ;;  %3306 = vmatprep.mubr.f32.mxu1 %v517_v6  ;;  %v5436_v20 = vld [vmem:[#allocation7 + $0x30] sm:$0xff]  ;;  %v1050_v6 = vld [vmem:[#allocation11 + $0x78] sm:$0xff] }
 0x27e   :  { %4062 = vmatprep.subr.bf16.mxu1 %v5381_v28 }
 0x27f   :  { %3416 = vmatmul.mubr.f32.gmra.mrb[34].mxu0 %v5426_v15 }
 0x280   :  { %3307 = vmatmul.mubr.f32.gmra.mrb[4].mxu1 %v518_v14  ;;  %3418 = vmatprep.mubr.f32.mxu0 %v5428_v16  ;;  %v710_v14 = vld [vmem:[#allocation5 + $0x68] sm:$0xff] }
 0x281   :  { %4064 = vmatpush3.bf16.msra.mxu1 %v5381_v28  ;;  %3309 = vmatprep.mubr.f32.mxu1 %v519_v12  ;;  %v5452_v28 = vld [vmem:[#allocation7 + $0x50] sm:$0xff] }
 0x282   :  { %4066 = vmatprep.subr.bf16.mxu1 %v5387_v36  ;;  %v711_v12 = vld [vmem:[#allocation5 + $0x70] sm:$0xff] }
 0x283   :  { %3419 = vmatmul.mubr.f32.gmra.mrb[36].mxu0 %v5434_v19 }
 0x284   :  { %3310 = vmatmul.mubr.f32.gmra.mrb[6].mxu1 %v520_v17  ;;  %3421 = vmatprep.mubr.f32.mxu0 %v5436_v20  ;;  %v4145_v17 = vpack.c.bf16 %v1050_v6, %v1049_v10 }
 0x285   :  { %4068 = vmatpush3.bf16.msra.mxu1 %v5387_v36  ;;  %3312 = vmatprep.mubr.f32.mxu1 %v521_v18  ;;  %v5466_v36 = vld [vmem:[#allocation5] sm:$0xff] }
 0x286   :  { %4070 = vmatprep.subr.bf16.mxu1 %v5393_v44  ;;  %v1019_v18 = vsub.f32 %v5359_v3, %v5466_v36  ;;  %v1023_v3 = vsub.f32 %v5428_v16, %v5487_v49 }
 0x287   :  { %3422 = vmatmul.mubr.f32.gmra.mrb[38].mxu0 %v5442_v23 }
 0x288   :  { %3313 = vmatmul.mubr.f32.gmra.mrb[8].mxu1 %v522_v21  ;;  %3424 = vmatprep.mubr.f32.mxu0 %v5444_v24  ;;  %v712_v21 = vld [vmem:[#allocation5 + $0x78] sm:$0xff] }
 0x289   :  { %4072 = vmatpush3.bf16.msra.mxu1 %v5393_v44  ;;  %3315 = vmatprep.mubr.f32.mxu1 %v523_v22  ;;  %v4121_v44 = vpack.c.bf16 %v1038_v40, %v1037_v39  ;;  %v1020_v22 = vsub.f32 %v5418_v11, %v5476_v42  ;;  %v1026_v11 = vsub.f32 %v5442_v23, %v704_v58  ;;  %v1202_v39 = vld [vmem:[#allocation14 + $0x30] sm:$0xff]  ;;  %v1203_v40 = vld [vmem:[#allocation14 + $0x38] sm:$0xff] }
 0x28a   :  { %4074 = vmatprep.subr.bf16.mxu1 %v5399_v52  ;;  %v1033_v23 = vsub.f32 %v5470_v41, %v711_v12 }
 0x28b   :  { %3425 = vmatmul.mubr.f32.gmra.mrb[40].mxu0 %v5450_v27  ;;  %v1196_v27 = vld [vmem:[#allocation14] sm:$0xff] }
 0x28c   :  { %3316 = vmatmul.mubr.f32.gmra.mrb[10].mxu1 %v524_v25  ;;  %3427 = vmatprep.mubr.f32.mxu0 %v5452_v28  ;;  %v1021_v25 = vsub.f32 %v5420_v13, %v5478_v43  ;;  %v1027_v13 = vsub.f32 %v5444_v24, %v705_v59  ;;  %v1034_v24 = vsub.f32 %v5480_v45, %v712_v21 }
 0x28d   :  { %4076 = vmatpush3.bf16.msra.mxu1 %v5399_v52  ;;  %3318 = vmatprep.mubr.f32.mxu1 %v525_v26  ;;  %v1042_v52 = vld [vmem:[#allocation11 + $0x38] sm:$0xff]  ;;  %v1022_v26 = vsub.f32 %v5426_v15, %v5485_v48  ;;  %v1029_v15 = vsub.f32 %v5452_v28, %v707_v1  ;;  %v1197_v28 = vld [vmem:[#allocation14 + $0x8] sm:$0xff] }
 0x28e   :  { %4078 = vmatprep.subr.bf16.mxu1 %v5405_v60  ;;  %v4129_v55 = vpack.c.bf16 %v1042_v52, %v1041_v51  ;;  %v4149_v33 = vpack.c.bf16 %v1197_v28, %v1196_v27  ;;  %v1210_v51 = vld [vmem:[#allocation14 + $0x70] sm:$0xff]  ;;  %v1211_v52 = vld [vmem:[#allocation14 + $0x78] sm:$0xff] }
 0x28f   :  { %3428 = vmatmul.mubr.f32.gmra.mrb[42].mxu0 %v5458_v31  ;;  %v1383_v28 = vld [vmem:[#allocation16 + $0x18] sm:$0xff] }
 0x290   :  { %3319 = vmatmul.mubr.f32.gmra.mrb[12].mxu1 %v526_v29  ;;  %3430 = vmatprep.mubr.f32.mxu0 %v5460_v34  ;;  %v1024_v29 = vsub.f32 %v5434_v19, %v702_v53  ;;  %v1031_v19 = vsub.f32 %v5460_v34, %v709_v8 }
 0x291   :  { %4080 = vmatpush3.bf16.msra.mxu1 %v5405_v60  ;;  %3321 = vmatprep.mubr.f32.mxu1 %v527_v30  ;;  %v4133_v60 = vpack.c.bf16 %v1044_v57, %v1043_v56  ;;  %v1025_v30 = vsub.f32 %v5436_v20, %v703_v54  ;;  %v1032_v20 = vsub.f32 %v5468_v38, %v710_v14 }
 0x292   :  { %4082 = vmatprep.subr.bf16.mxu1 %v5411_v7  ;;  %4150 = vmatprep.subr.bf16.mxu0 %v4149_v33 }
 0x293   :  { %3431 = vmatmul.mubr.f32.gmra.mrb[44].mxu0 %v5468_v38 }
 0x294   :  { %3322 = vmatmul.mubr.f32.gmra.mrb[14].mxu1 %v528_v35  ;;  %3433 = vmatprep.mubr.f32.mxu0 %v5470_v41  ;;  %v1199_v35 = vld [vmem:[#allocation14 + $0x18] sm:$0xff]  ;;  %v4161_v41 = vpack.c.bf16 %v1203_v40, %v1202_v39  ;;  %v1386_v39 = vld [vmem:[#allocation16 + $0x30] sm:$0xff] }
 0x295   :  { %4084 = vmatpush3.bf16.msra.mxu1 %v5411_v7  ;;  %3356 = vmatprep.mubr.f32.mxu1 %v5466_v36  ;;  %v708_v7 = vld [vmem:[#allocation5 + $0x58] sm:$0xff]  ;;  %v1200_v36 = vld [vmem:[#allocation14 + $0x20] sm:$0xff] }
 0x296   :  { %4118 = vmatprep.subr.bf16.mxu1 %v4117_v37  ;;  %v1030_v16 = vsub.f32 %v5458_v31, %v708_v7  ;;  %4152 = vmatpush3.bf16.msra.mxu0 %v4149_v33  ;;  %v1198_v31 = vld [vmem:[#allocation14 + $0x10] sm:$0xff]  ;;  %v1387_v40 = vld [vmem:[#allocation16 + $0x38] sm:$0xff] }
 0x297   :  { %3434 = vmatmul.mubr.f32.gmra.mrb[46].mxu0 %v5480_v45  ;;  %v4153_v34 = vpack.c.bf16 %v1199_v35, %v1198_v31  ;;  %v1206_v45 = vld [vmem:[#allocation14 + $0x50] sm:$0xff]  ;;  %v1384_v35 = vld [vmem:[#allocation16 + $0x20] sm:$0xff] }
 0x298   :  { %3357 = vmatmul.mubr.f32.vlgmr.msra.gmra.mrb[16].mxu1 %v5476_v42  ;;  %v1204_v42 = vld [vmem:[#allocation14 + $0x40] sm:$0xff]  ;;  %v4169_v47 = vpack.c.bf16 %v1207_v46, %v1206_v45  ;;  %v1389_v45 = vld [vmem:[#allocation16 + $0x48] sm:$0xff] }
 0x299   :  { %4120 = vmatpush3.bf16.msra.mxu1 %v4117_v37  ;;  %3359 = vmatprep.mubr.f32.mxu1 %v5478_v43  ;;  %v1201_v37 = vld [vmem:[#allocation14 + $0x28] sm:$0xff] }
 0x29a   :  { %4122 = vmatprep.subr.bf16.mxu1 %v4121_v44  ;;  %4154 = vmatprep.subr.bf16.mxu0 %v4153_v34  ;;  %v4157_v38 = vpack.c.bf16 %v1201_v37, %v1200_v36  ;;  %v1205_v43 = vld [vmem:[#allocation14 + $0x48] sm:$0xff] }
 0x29b   :  { %4156 = vmatpush3.bf16.msra.mxu0 %v4153_v34  ;;  %v1385_v34 = vld [vmem:[#allocation16 + $0x28] sm:$0xff] }
 0x29c   :  { %3360 = vmatmul.mubr.f32.gmra.mrb[18].mxu1 %v5485_v48  ;;  %4158 = vmatprep.subr.bf16.mxu0 %v4157_v38  ;;  %v1208_v48 = vld [vmem:[#allocation14 + $0x60] sm:$0xff]  ;;  %v4189_v37 = vpack.c.bf16 %v1385_v34, %v1384_v35  ;;  %v1566_v34 = vld [vmem:[#allocation19 + $0x10] sm:$0xff] }
 0x29d   :  { %4124 = vmatpush3.bf16.msra.mxu1 %v4121_v44  ;;  %3362 = vmatprep.mubr.f32.mxu1 %v5487_v49  ;;  %v4165_v44 = vpack.c.bf16 %v1205_v43, %v1204_v42  ;;  %v1209_v49 = vld [vmem:[#allocation14 + $0x68] sm:$0xff]  ;;  %v4193_v42 = vpack.c.bf16 %v1387_v40, %v1386_v39 }
 0x29e   :  { %4126 = vmatprep.subr.bf16.mxu1 %v4125_v50 }
 0x29f   :  { %4160 = vmatpush3.bf16.msra.mxu0 %v4157_v38 }
 0x2a0   :  { %3363 = vmatmul.mubr.f32.gmra.mrb[20].mxu1 %v702_v53  ;;  %4162 = vmatprep.subr.bf16.mxu0 %v4161_v41  ;;  %v4177_v53 = vpack.c.bf16 %v1211_v52, %v1210_v51 }
 0x2a1   :  { %4128 = vmatpush3.bf16.msra.mxu1 %v4125_v50  ;;  %3365 = vmatprep.mubr.f32.mxu1 %v703_v54  ;;  %v4173_v50 = vpack.c.bf16 %v1209_v49, %v1208_v48  ;;  %v1564_v54 = vld [vmem:[#allocation19] sm:$0xff]  ;;  %v1390_v49 = vld [vmem:[#allocation16 + $0x50] sm:$0xff] }
 0x2a2   :  { %4130 = vmatprep.subr.bf16.mxu1 %v4129_v55 }
 0x2a3   :  { %4164 = vmatpush3.bf16.msra.mxu0 %v4161_v41 }
 0x2a4   :  { %3366 = vmatmul.mubr.f32.gmra.mrb[22].mxu1 %v704_v58  ;;  %4166 = vmatprep.subr.bf16.mxu0 %v4165_v44 }
 0x2a5   :  { %4132 = vmatpush3.bf16.msra.mxu1 %v4129_v55  ;;  %3368 = vmatprep.mubr.f32.mxu1 %v705_v59  ;;  %v1565_v55 = vld [vmem:[#allocation19 + $0x8] sm:$0xff] }
 0x2a6   :  { %4134 = vmatprep.subr.bf16.mxu1 %v4133_v60  ;;  %v5512_v56 = vpack.c.bf16 %v1565_v55, %v1564_v54  ;;  %v1392_v54 = vld [vmem:[#allocation16 + $0x60] sm:$0xff]  ;;  %v1393_v55 = vld [vmem:[#allocation16 + $0x68] sm:$0xff] }
 0x2a7   :  { %4168 = vmatpush3.bf16.msra.mxu0 %v4165_v44  ;;  %v1388_v44 = vld [vmem:[#allocation16 + $0x40] sm:$0xff] }
 0x2a8   :  { %3369 = vmatmul.mubr.f32.gmra.mrb[24].mxu1 %v706_v63  ;;  %4170 = vmatprep.subr.bf16.mxu0 %v4169_v47 }
 0x2a9   :  { %4136 = vmatpush3.bf16.msra.mxu1 %v4133_v60  ;;  %3371 = vmatprep.mubr.f32.mxu1 %v707_v1 }
 0x2aa   :  { %4138 = vmatprep.subr.bf16.mxu1 %v4137_v2 }
 0x2ab   :  { %4172 = vmatpush3.bf16.msra.mxu0 %v4169_v47  ;;  %v4197_v47 = vpack.c.bf16 %v1389_v45, %v1388_v44  ;;  %v1568_v44 = vld [vmem:[#allocation19 + $0x20] sm:$0xff]  ;;  %v1569_v45 = vld [vmem:[#allocation19 + $0x28] sm:$0xff] }
 0x2ac   :  { %3372 = vmatmul.mubr.f32.gmra.mrb[26].mxu1 %v708_v7  ;;  %4174 = vmatprep.subr.bf16.mxu0 %v4173_v50 }
 0x2ad   :  { %4140 = vmatpush3.bf16.msra.mxu1 %v4137_v2  ;;  %3374 = vmatprep.mubr.f32.mxu1 %v709_v8 }
 0x2ae   :  { %4142 = vmatprep.subr.bf16.mxu1 %v4141_v9 }
 0x2af   :  { %4176 = vmatpush3.bf16.msra.mxu0 %v4173_v50  ;;  %v1391_v50 = vld [vmem:[#allocation16 + $0x58] sm:$0xff] }
 0x2b0   :  { %3375 = vmatmul.mubr.f32.gmra.mrb[28].mxu1 %v710_v14  ;;  %4178 = vmatprep.subr.bf16.mxu0 %v4177_v53  ;;  %v4201_v52 = vpack.c.bf16 %v1391_v50, %v1390_v49  ;;  %v4221_v50 = vpack.c.bf16 %v1569_v45, %v1568_v44  ;;  %v1574_v44 = vld [vmem:[#allocation19 + $0x50] sm:$0xff]  ;;  %v1575_v45 = vld [vmem:[#allocation19 + $0x58] sm:$0xff] }
 0x2b1   :  { %4144 = vmatpush3.bf16.msra.mxu1 %v4141_v9  ;;  %3377 = vmatprep.mubr.f32.mxu1 %v711_v12 }
 0x2b2   :  { %4146 = vmatprep.subr.bf16.mxu1 %v4145_v17 }
 0x2b3   :  { %4180 = vmatpush3.bf16.msra.mxu0 %v4177_v53 }
 0x2b4   :  { %3378 = vmatmul.mubr.f32.gmra.mrb[30].mxu1 %v712_v21  ;;  %4214 = vmatprep.subr.bf16.mxu0 %v5512_v56 }
 0x2b5   :  { %4148 = vmatpush3.bf16.msra.mxu1 %v4145_v17  ;;  %3468 = vmatprep.mubr.f32.mxu1 %v1019_v18 }
 0x2b8   :  { %3469 = vmatmul.mubr.f32.vlgmr.msra.gmra.mrb[32].mxu1 %v1020_v22 }
 0x2b9   :  { %3471 = vmatprep.mubr.f32.mxu1 %v1021_v25 }
 0x2bc   :  { %3472 = vmatmul.mubr.f32.gmra.mrb[34].mxu1 %v1022_v26 }
 0x2bd   :  { %3474 = vmatprep.mubr.f32.mxu1 %v1023_v3 }
 0x2c0   :  { %3475 = vmatmul.mubr.f32.gmra.mrb[36].mxu1 %v1024_v29 }
 0x2c1   :  { %3477 = vmatprep.mubr.f32.mxu1 %v1025_v30 }
 0x2c4   :  { %3478 = vmatmul.mubr.f32.gmra.mrb[38].mxu1 %v1026_v11 }
 0x2c5   :  { %3480 = vmatprep.mubr.f32.mxu1 %v1027_v13 }
 0x2c8   :  { %3481 = vmatmul.mubr.f32.gmra.mrb[40].mxu1 %v1028_v32 }
 0x2c9   :  { %3483 = vmatprep.mubr.f32.mxu1 %v1029_v15 }
 0x2cc   :  { %3484 = vmatmul.mubr.f32.gmra.mrb[42].mxu1 %v1030_v16  ;;  %v1380_v16 = vld [vmem:[#allocation16] sm:$0xff] }
 0x2cd   :  { %3486 = vmatprep.mubr.f32.mxu1 %v1031_v19  ;;  %v1381_v19 = vld [vmem:[#allocation16 + $0x8] sm:$0xff] }
 0x2ce   :  { %v4181_v27 = vpack.c.bf16 %v1381_v19, %v1380_v16  ;;  %v4205_v19 = vpack.c.bf16 %v1393_v55, %v1392_v54  ;;  %v1571_v54 = vld [vmem:[#allocation19 + $0x38] sm:$0xff] }
 0x2d0   :  { %3487 = vmatmul.mubr.f32.gmra.mrb[44].mxu1 %v1032_v20  ;;  %v1382_v20 = vld [vmem:[#allocation16 + $0x10] sm:$0xff]  ;;  %4182 = vmatprep.subr.bf16.mxu1 %v4181_v27 }
 0x2d1   :  { %3489 = vmatprep.mubr.f32.mxu1 %v1033_v23  ;;  %v4185_v31 = vpack.c.bf16 %v1383_v28, %v1382_v20  ;;  %4184 = vmatpush3.bf16.msra.mxu1 %v4181_v27 }
 0x2d3   :  { %4186 = vmatprep.subr.bf16.mxu1 %v4185_v31 }
 0x2d4   :  { %3490 = vmatmul.mubr.f32.gmra.mrb[46].mxu1 %v1034_v24 }
 0x2d5   :  { %4188 = vmatpush3.bf16.msra.mxu1 %v4185_v31 }
 0x2d6   :  { %4190 = vmatprep.subr.bf16.mxu1 %v4189_v37 }
 0x2d9   :  { %4192 = vmatpush3.bf16.msra.mxu1 %v4189_v37  ;;  %v1567_v37 = vld [vmem:[#allocation19 + $0x18] sm:$0xff] }
 0x2da   :  { %4194 = vmatprep.subr.bf16.mxu1 %v4193_v42 }
 0x2dd   :  { %4196 = vmatpush3.bf16.msra.mxu1 %v4193_v42  ;;  %v4217_v42 = vpack.c.bf16 %v1567_v37, %v1566_v34  ;;  %v1572_v34 = vld [vmem:[#allocation19 + $0x40] sm:$0xff]  ;;  %v1573_v37 = vld [vmem:[#allocation19 + $0x48] sm:$0xff] }
 0x2de   :  { %4198 = vmatprep.subr.bf16.mxu1 %v4197_v47 }
 0x2e1   :  { %4200 = vmatpush3.bf16.msra.mxu1 %v4197_v47 }
 0x2e2   :  { %4202 = vmatprep.subr.bf16.mxu1 %v4201_v52 }
 0x2e5   :  { %4204 = vmatpush3.bf16.msra.mxu1 %v4201_v52  ;;  %v1570_v52 = vld [vmem:[#allocation19 + $0x30] sm:$0xff] }
 0x2e6   :  { %4206 = vmatprep.subr.bf16.mxu1 %v4205_v19  ;;  %v4225_v0 = vpack.c.bf16 %v1571_v54, %v1570_v52  ;;  %v1576_v52 = vld [vmem:[#allocation19 + $0x60] sm:$0xff]  ;;  %v1577_v54 = vld [vmem:[#allocation19 + $0x68] sm:$0xff] }
 0x2e9   :  { %4208 = vmatpush3.bf16.msra.mxu1 %v4205_v19 }
 0x34b   :  { %v5515_v57 = vpop.f32.mrb[0].mxu1 }
 0x34c   :  { %v5517_v58 = vpop.f32.mrb[1].mxu1 }
 0x34e   :  { %v5519_v59 = vpop.f32.mrb[32].mxu0 }
 0x34f   :  { %v5521_v60 = vpop.f32.mrb[2].mxu1  ;;  %v5523_v61 = vpop.f32.mrb[33].mxu0 }
 0x350   :  { %v5525_v62 = vpop.f32.mrb[3].mxu1 }
 0x352   :  { %v5527_v63 = vpop.f32.mrb[34].mxu0 }
 0x353   :  { %v5529_v1 = vpop.f32.mrb[4].mxu1  ;;  %v5531_v2 = vpop.f32.mrb[35].mxu0 }
 0x354   :  { %v5533_v4 = vpop.f32.mrb[5].mxu1 }
 0x356   :  { %v5535_v5 = vpop.f32.mrb[36].mxu0 }
 0x357   :  { %v5537_v7 = vpop.f32.mrb[6].mxu1  ;;  %v5539_v8 = vpop.f32.mrb[37].mxu0 }
 0x358   :  { %v5541_v9 = vpop.f32.mrb[7].mxu1 }
 0x35a   :  { %v5543_v10 = vpop.f32.mrb[38].mxu0 }
 0x35b   :  { %v5545_v6 = vpop.f32.mrb[8].mxu1  ;;  %v5547_v14 = vpop.f32.mrb[39].mxu0 }
 0x35c   :  { %v5549_v12 = vpop.f32.mrb[9].mxu1 }
 0x35e   :  { %v5551_v17 = vpop.f32.mrb[40].mxu0 }
 0x35f   :  { %v5553_v18 = vpop.f32.mrb[10].mxu1  ;;  %v5555_v21 = vpop.f32.mrb[41].mxu0 }
 0x360   :  { %v5557_v22 = vpop.f32.mrb[11].mxu1 }
 0x362   :  { %v5559_v25 = vpop.f32.mrb[42].mxu0 }
 0x363   :  { %v5561_v26 = vpop.f32.mrb[12].mxu1  ;;  %v5563_v3 = vpop.f32.mrb[43].mxu0 }
 0x364   :  { %5848 = vst [vmem:[#allocation36_spill] sm:$0xff] %v5561_v26  ;;  %v5565_v29 = vpop.f32.mrb[13].mxu1 }
 0x366   :  { %v5567_v30 = vpop.f32.mrb[44].mxu0 }
 0x367   :  { %v5569_v11 = vpop.f32.mrb[14].mxu1  ;;  %v5571_v13 = vpop.f32.mrb[45].mxu0 }
 0x368   :  { %5849 = vst [vmem:[#allocation37_spill] sm:$0xff] %v5569_v11  ;;  %v5573_v32 = vpop.f32.mrb[15].mxu1 }
 0x369   :  { %5850 = vst [vmem:[#allocation38_spill] sm:$0xff] %v5573_v32 }
 0x36a   :  { %v5575_v15 = vpop.f32.mrb[46].mxu0 }
 0x36b   :  { %v5577_v23 = vpop.f32.mrb[16].mxu1  ;;  %v5579_v24 = vpop.f32.mrb[47].mxu0 }
 0x36c   :  { %v5581_v33 = vpop.f32.mrb[17].mxu1 }
 0x36f   :  { %v5583_v36 = vpop.f32.mrb[18].mxu1 }
 0x370   :  { %v5585_v38 = vpop.f32.mrb[19].mxu1 }
 0x373   :  { %v5587_v41 = vpop.f32.mrb[20].mxu1 }
 0x374   :  { %v5589_v43 = vpop.f32.mrb[21].mxu1 }
 0x377   :  { %v5591_v46 = vpop.f32.mrb[22].mxu1 }
 0x378   :  { %v5593_v48 = vpop.f32.mrb[23].mxu1 }
 0x37b   :  { %v5595_v51 = vpop.f32.mrb[24].mxu1 }
 0x37c   :  { %v5597_v53 = vpop.f32.mrb[25].mxu1 }
 0x37f   :  { %v5599_v16 = vpop.f32.mrb[26].mxu1 }
 0x380   :  { %v5601_v20 = vpop.f32.mrb[27].mxu1 }
 0x383   :  { %v5603_v27 = vpop.f32.mrb[28].mxu1 }
 0x384   :  { %v5605_v28 = vpop.f32.mrb[29].mxu1 }
 0x387   :  { %v5607_v31 = vpop.f32.mrb[30].mxu1 }
 0x388   :  { %v5609_v35 = vpop.f32.mrb[31].mxu1 }
 0x38b   :  { %v3470_v39 = vpop.f32.mrb[32].mxu1 }
 0x38c   :  { %v1117_v40 = vpop.f32.mrb[33].mxu1 }
 0x38d   :  { %3524 = vmatprep.mubr.f32.mxu0 %v1117_v40 }
 0x38e   :  { %3525 = vmatmul.mubr.f32.vlgmr.msra.gmra.mrb[48].mxu0 %v3470_v39 }
 0x38f   :  { %v3473_v47 = vpop.f32.mrb[34].mxu1  ;;  %4216 = vmatpush3.bf16.msra.mxu0 %v5512_v56  ;;  %v4229_v56 = vpack.c.bf16 %v1573_v37, %v1572_v34  ;;  %v1578_v34 = vld [vmem:[#allocation19 + $0x70] sm:$0xff]  ;;  %v1579_v37 = vld [vmem:[#allocation19 + $0x78] sm:$0xff] }
 0x390   :  { %v1127_v49 = vpop.f32.mrb[35].mxu1  ;;  %4218 = vmatprep.subr.bf16.mxu0 %v4217_v42 }
 0x391   :  { %3527 = vmatprep.mubr.f32.mxu0 %v1127_v49 }
 0x392   :  { %3528 = vmatmul.mubr.f32.gmra.mrb[50].mxu0 %v3473_v47 }
 0x393   :  { %v3476_v55 = vpop.f32.mrb[36].mxu1  ;;  %4220 = vmatpush3.bf16.msra.mxu0 %v4217_v42  ;;  %v4233_v42 = vpack.c.bf16 %v1575_v45, %v1574_v44  ;;  %v1548_v44 = vld [vmem:[#allocation17] sm:$0xff]  ;;  %v1549_v45 = vld [vmem:[#allocation17 + $0x8] sm:$0xff] }
 0x394   :  { %v1137_v19 = vpop.f32.mrb[37].mxu1  ;;  %4222 = vmatprep.subr.bf16.mxu0 %v4221_v50 }
 0x395   :  { %3530 = vmatprep.mubr.f32.mxu0 %v1137_v19 }
 0x396   :  { %3531 = vmatmul.mubr.f32.gmra.mrb[52].mxu0 %v3476_v55 }
 0x397   :  { %v3479_v39 = vpop.f32.mrb[38].mxu1  ;;  %4224 = vmatpush3.bf16.msra.mxu0 %v4221_v50  ;;  %v4237_v50 = vpack.c.bf16 %v1577_v54, %v1576_v52  ;;  %v1550_v52 = vld [vmem:[#allocation17 + $0x10] sm:$0xff]  ;;  %v1551_v54 = vld [vmem:[#allocation17 + $0x18] sm:$0xff] }
 0x398   :  { %v1147_v40 = vpop.f32.mrb[39].mxu1  ;;  %4226 = vmatprep.subr.bf16.mxu0 %v4225_v0 }
 0x399   :  { %3533 = vmatprep.mubr.f32.mxu0 %v1147_v40 }
 0x39a   :  { %3534 = vmatmul.mubr.f32.gmra.mrb[54].mxu0 %v3479_v39 }
 0x39b   :  { %v3482_v49 = vpop.f32.mrb[40].mxu1  ;;  %4228 = vmatpush3.bf16.msra.mxu0 %v4225_v0  ;;  %v4241_v0 = vpack.c.bf16 %v1579_v37, %v1578_v34  ;;  %v1554_v34 = vld [vmem:[#allocation17 + $0x30] sm:$0xff]  ;;  %v1555_v37 = vld [vmem:[#allocation17 + $0x38] sm:$0xff] }
 0x39c   :  { %v1157_v47 = vpop.f32.mrb[41].mxu1  ;;  %4230 = vmatprep.subr.bf16.mxu0 %v4229_v56 }
 0x39d   :  { %3536 = vmatprep.mubr.f32.mxu0 %v1157_v47 }
 0x39e   :  { %3537 = vmatmul.mubr.f32.gmra.mrb[56].mxu0 %v3482_v49 }
 0x39f   :  { %v3485_v19 = vpop.f32.mrb[42].mxu1  ;;  %4232 = vmatpush3.bf16.msra.mxu0 %v4229_v56  ;;  %v4245_v56 = vpack.c.bf16 %v1549_v45, %v1548_v44  ;;  %v1558_v45 = vld [vmem:[#allocation17 + $0x50] sm:$0xff] }
 0x3a0   :  { %v1167_v55 = vpop.f32.mrb[43].mxu1  ;;  %4234 = vmatprep.subr.bf16.mxu0 %v4233_v42 }
 0x3a1   :  { %3539 = vmatprep.mubr.f32.mxu0 %v1167_v55  ;;  %v1553_v55 = vld [vmem:[#allocation17 + $0x28] sm:$0xff] }
 0x3a2   :  { %3540 = vmatmul.mubr.f32.gmra.mrb[58].mxu0 %v3485_v19  ;;  %v1552_v19 = vld [vmem:[#allocation17 + $0x20] sm:$0xff] }
 0x3a3   :  { %v3488_v40 = vpop.f32.mrb[44].mxu1  ;;  %4236 = vmatpush3.bf16.msra.mxu0 %v4233_v42  ;;  %v4249_v42 = vpack.c.bf16 %v1551_v54, %v1550_v52  ;;  %v1561_v52 = vld [vmem:[#allocation17 + $0x68] sm:$0xff] }
 0x3a4   :  { %v1177_v39 = vpop.f32.mrb[45].mxu1  ;;  %4238 = vmatprep.subr.bf16.mxu0 %v4237_v50 }
 0x3a5   :  { %3542 = vmatprep.mubr.f32.mxu0 %v1177_v39  ;;  %v1556_v39 = vld [vmem:[#allocation17 + $0x40] sm:$0xff] }
 0x3a6   :  { %3543 = vmatmul.mubr.f32.gmra.mrb[60].mxu0 %v3488_v40  ;;  %v4257_v40 = vpack.c.bf16 %v1555_v37, %v1554_v34 }
 0x3a7   :  { %v3491_v47 = vpop.f32.mrb[46].mxu1  ;;  %4240 = vmatpush3.bf16.msra.mxu0 %v4237_v50  ;;  %v4253_v50 = vpack.c.bf16 %v1553_v55, %v1552_v19  ;;  %v1563_v19 = vld [vmem:[#allocation17 + $0x78] sm:$0xff] }
 0x3a8   :  { %v1187_v49 = vpop.f32.mrb[47].mxu1  ;;  %4242 = vmatprep.subr.bf16.mxu0 %v4241_v0 }
 0x3a9   :  { %3545 = vmatprep.mubr.f32.mxu0 %v1187_v49 }
 0x3aa   :  { %3546 = vmatmul.mubr.f32.gmra.mrb[62].mxu0 %v3491_v47  ;;  %v1559_v47 = vld [vmem:[#allocation17 + $0x58] sm:$0xff] }
 0x3ab   :  { %4244 = vmatpush3.bf16.msra.mxu0 %v4241_v0  ;;  %3636 = vmatprep.mubr.f32.mxu0 %v5581_v33  ;;  %v1557_v0 = vld [vmem:[#allocation17 + $0x48] sm:$0xff]  ;;  %v4265_v49 = vpack.c.bf16 %v1559_v47, %v1558_v45 }
 0x3ac   :  { %4246 = vmatprep.subr.bf16.mxu0 %v4245_v56  ;;  %v4261_v44 = vpack.c.bf16 %v1557_v0, %v1556_v39 }
 0x3ae   :  { %3637 = vmatmul.mubr.f32.vlgmr.msra.gmra.mrb[64].mxu0 %v5577_v23 }
 0x3af   :  { %3639 = vmatprep.mubr.f32.mxu0 %v5585_v38  ;;  %4248 = vmatpush3.bf16.msra.mxu0 %v4245_v56  ;;  %v1560_v56 = vld [vmem:[#allocation17 + $0x60] sm:$0xff] }
 0x3b0   :  { %4250 = vmatprep.subr.bf16.mxu0 %v4249_v42  ;;  %v4269_v54 = vpack.c.bf16 %v1561_v52, %v1560_v56 }
 0x3b2   :  { %3640 = vmatmul.mubr.f32.gmra.mrb[66].mxu0 %v5583_v36 }
 0x3b3   :  { %3642 = vmatprep.mubr.f32.mxu0 %v5589_v43  ;;  %4252 = vmatpush3.bf16.msra.mxu0 %v4249_v42  ;;  %v1562_v42 = vld [vmem:[#allocation17 + $0x70] sm:$0xff] }
 0x3b4   :  { %4254 = vmatprep.subr.bf16.mxu0 %v4253_v50  ;;  %v4273_v55 = vpack.c.bf16 %v1563_v19, %v1562_v42 }
 0x3b6   :  { %3643 = vmatmul.mubr.f32.gmra.mrb[68].mxu0 %v5587_v41 }
 0x3b7   :  { %3645 = vmatprep.mubr.f32.mxu0 %v5593_v48  ;;  %4256 = vmatpush3.bf16.msra.mxu0 %v4253_v50 }
 0x3b8   :  { %4258 = vmatprep.subr.bf16.mxu0 %v4257_v40 }
 0x3ba   :  { %3646 = vmatmul.mubr.f32.gmra.mrb[70].mxu0 %v5591_v46 }
 0x3bb   :  { %3648 = vmatprep.mubr.f32.mxu0 %v5597_v53  ;;  %4260 = vmatpush3.bf16.msra.mxu0 %v4257_v40 }
 0x3bc   :  { %4262 = vmatprep.subr.bf16.mxu0 %v4261_v44 }
 0x3be   :  { %3649 = vmatmul.mubr.f32.gmra.mrb[72].mxu0 %v5595_v51 }
 0x3bf   :  { %3651 = vmatprep.mubr.f32.mxu0 %v5601_v20  ;;  %4264 = vmatpush3.bf16.msra.mxu0 %v4261_v44 }
 0x3c0   :  { %4266 = vmatprep.subr.bf16.mxu0 %v4265_v49 }
 0x3c2   :  { %3652 = vmatmul.mubr.f32.gmra.mrb[74].mxu0 %v5599_v16 }
 0x3c3   :  { %3654 = vmatprep.mubr.f32.mxu0 %v5605_v28  ;;  %4268 = vmatpush3.bf16.msra.mxu0 %v4265_v49 }
 0x3c4   :  { %4270 = vmatprep.subr.bf16.mxu0 %v4269_v54 }
 0x3c6   :  { %3655 = vmatmul.mubr.f32.gmra.mrb[76].mxu0 %v5603_v27 }
 0x3c7   :  { %3657 = vmatprep.mubr.f32.mxu0 %v5609_v35  ;;  %4272 = vmatpush3.bf16.msra.mxu0 %v4269_v54 }
 0x3c8   :  { %4274 = vmatprep.subr.bf16.mxu0 %v4273_v55 }
 0x3ca   :  { %3658 = vmatmul.mubr.f32.gmra.mrb[78].mxu0 %v5607_v31 }
 0x3cb   :  { %4276 = vmatpush3.bf16.msra.mxu0 %v4273_v55  ;;  %3692 = vmatprep.mubr.f32.mxu0 %v5523_v61  ;;  %v1394_v61 = vld [vmem:[#allocation16 + $0x70] sm:$0xff] }
 0x3ce   :  { %3693 = vmatmul.mubr.f32.vlgmr.msra.gmra.mrb[64].mxu0 %v5519_v59  ;;  %v1395_v59 = vld [vmem:[#allocation16 + $0x78] sm:$0xff] }
 0x3cf   :  { %3695 = vmatprep.mubr.f32.mxu0 %v5531_v2  ;;  %v4209_v2 = vpack.c.bf16 %v1395_v59, %v1394_v61 }
 0x3d1   :  { %4210 = vmatprep.subr.bf16.mxu1 %v4209_v2 }
 0x3d2   :  { %3696 = vmatmul.mubr.f32.gmra.mrb[66].mxu0 %v5527_v63  ;;  %4212 = vmatpush3.bf16.msra.mxu1 %v4209_v2  ;;  %v2856_v63 = vld [vmem:[%s5805_s11] ss:$0 sm:$0xff] }
 0x3d3   :  { %3698 = vmatprep.mubr.f32.mxu0 %v5539_v8 }
 0x3d6   :  { %3699 = vmatmul.mubr.f32.gmra.mrb[68].mxu0 %v5535_v5 }
 0x3d7   :  { %3701 = vmatprep.mubr.f32.mxu0 %v5547_v14 }
 0x3da   :  { %3702 = vmatmul.mubr.f32.gmra.mrb[70].mxu0 %v5543_v10 }
 0x3db   :  { %3704 = vmatprep.mubr.f32.mxu0 %v5555_v21 }
 0x3de   :  { %3705 = vmatmul.mubr.f32.gmra.mrb[72].mxu0 %v5551_v17 }
 0x3df   :  { %3707 = vmatprep.mubr.f32.mxu0 %v5563_v3 }
 0x3e2   :  { %3708 = vmatmul.mubr.f32.gmra.mrb[74].mxu0 %v5559_v25 }
 0x3e3   :  { %3710 = vmatprep.mubr.f32.mxu0 %v5571_v13 }
 0x3e6   :  { %3711 = vmatmul.mubr.f32.gmra.mrb[76].mxu0 %v5567_v30 }
 0x3e7   :  { %3713 = vmatprep.mubr.f32.mxu0 %v5579_v24 }
 0x3ea   :  { %3714 = vmatmul.mubr.f32.gmra.mrb[78].mxu0 %v5575_v15 }
 0x461   :  { %v3526_v5 = vpop.f32.mrb[48].mxu0 }
 0x462   :  { %v1291_v8 = vadd.f32 %v3526_v5, %v2856_v63  ;;  %v1285_v10 = vpop.f32.mrb[49].mxu0 }
 0x463   :  { %v1286_v14 = vadd.f32 %v2856_v63, %v1285_v10 }
 0x464   :  { %v1365_v25 = vmax.f32 %v1291_v8, 0.0 }
 0x465   :  { %v1364_v17 = vmax.f32 %v1286_v14, 0.0  ;;  %v3529_v21 = vpop.f32.mrb[50].mxu0 }
 0x466   :  { %v1301_v3 = vadd.f32 %v3529_v21, %v2856_v63  ;;  %v1295_v13 = vpop.f32.mrb[51].mxu0 }
 0x467   :  { %v1296_v50 = vadd.f32 %v2856_v63, %v1295_v13  ;;  %3580 = vmatprep.mubr.f32.mxu1 %v1364_v17 }
 0x468   :  { %3581 = vmatmul.mubr.f32.vlgmr.msra.gmra.mrb[48].mxu1 %v1365_v25  ;;  %v1367_v34 = vmax.f32 %v1301_v3, 0.0 }
 0x469   :  { %v1366_v30 = vmax.f32 %v1296_v50, 0.0  ;;  %v3532_v24 = vpop.f32.mrb[52].mxu0 }
 0x46a   :  { %v1311_v15 = vadd.f32 %v3532_v24, %v2856_v63  ;;  %v1305_v37 = vpop.f32.mrb[53].mxu0 }
 0x46b   :  { %v1306_v40 = vadd.f32 %v2856_v63, %v1305_v37  ;;  %3583 = vmatprep.mubr.f32.mxu1 %v1366_v30 }
 0x46c   :  { %3584 = vmatmul.mubr.f32.gmra.mrb[50].mxu1 %v1367_v34  ;;  %v1369_v44 = vmax.f32 %v1311_v15, 0.0 }
 0x46d   :  { %v1368_v39 = vmax.f32 %v1306_v40, 0.0  ;;  %v3535_v0 = vpop.f32.mrb[54].mxu0 }
 0x46e   :  { %v1321_v45 = vadd.f32 %v3535_v0, %v2856_v63  ;;  %v1315_v47 = vpop.f32.mrb[55].mxu0 }
 0x46f   :  { %v1316_v49 = vadd.f32 %v2856_v63, %v1315_v47  ;;  %3586 = vmatprep.mubr.f32.mxu1 %v1368_v39 }
 0x470   :  { %3587 = vmatmul.mubr.f32.gmra.mrb[52].mxu1 %v1369_v44  ;;  %v1371_v54 = vmax.f32 %v1321_v45, 0.0 }
 0x471   :  { %v1370_v56 = vmax.f32 %v1316_v49, 0.0  ;;  %v3538_v52 = vpop.f32.mrb[56].mxu0 }
 0x472   :  { %v1331_v42 = vadd.f32 %v3538_v52, %v2856_v63  ;;  %v1325_v19 = vpop.f32.mrb[57].mxu0 }
 0x473   :  { %v1326_v55 = vadd.f32 %v2856_v63, %v1325_v19  ;;  %3589 = vmatprep.mubr.f32.mxu1 %v1370_v56 }
 0x474   :  { %3590 = vmatmul.mubr.f32.gmra.mrb[54].mxu1 %v1371_v54  ;;  %v1373_v2 = vmax.f32 %v1331_v42, 0.0 }
 0x475   :  { %v1372_v61 = vmax.f32 %v1326_v55, 0.0  ;;  %v3541_v59 = vpop.f32.mrb[58].mxu0 }
 0x476   :  { %v1341_v5 = vadd.f32 %v3541_v59, %v2856_v63  ;;  %v1335_v8 = vpop.f32.mrb[59].mxu0 }
 0x477   :  { %v1336_v10 = vadd.f32 %v2856_v63, %v1335_v8  ;;  %3592 = vmatprep.mubr.f32.mxu1 %v1372_v61  ;;  %v2021_v8 = vld [vmem:[#allocation8] sm:$0xff] }
 0x478   :  { %3593 = vmatmul.mubr.f32.gmra.mrb[56].mxu1 %v1373_v2  ;;  %v1375_v21 = vmax.f32 %v1341_v5, 0.0 }
 0x479   :  { %v1374_v14 = vmax.f32 %v1336_v10, 0.0  ;;  %v3544_v17 = vpop.f32.mrb[60].mxu0  ;;  %v2858_v10 = vld [vmem:[%s5810_s16] ss:$0 sm:$0xff] }
 0x47a   :  { %v1351_v25 = vadd.f32 %v3544_v17, %v2856_v63  ;;  %v1345_v3 = vpop.f32.mrb[61].mxu0 }
 0x47b   :  { %v1346_v13 = vadd.f32 %v2856_v63, %v1345_v3  ;;  %3595 = vmatprep.mubr.f32.mxu1 %v1374_v14 }
 0x47c   :  { %3596 = vmatmul.mubr.f32.gmra.mrb[58].mxu1 %v1375_v21  ;;  %v1377_v24 = vmax.f32 %v1351_v25, 0.0 }
 0x47d   :  { %v1376_v50 = vmax.f32 %v1346_v13, 0.0  ;;  %v3547_v30 = vpop.f32.mrb[62].mxu0 }
 0x47e   :  { %v1361_v34 = vadd.f32 %v3547_v30, %v2856_v63  ;;  %v1355_v15 = vpop.f32.mrb[63].mxu0 }
 0x47f   :  { %v1356_v37 = vadd.f32 %v2856_v63, %v1355_v15  ;;  %3598 = vmatprep.mubr.f32.mxu1 %v1376_v50 }
 0x480   :  { %3599 = vmatmul.mubr.f32.gmra.mrb[60].mxu1 %v1377_v24  ;;  %v1379_v39 = vmax.f32 %v1361_v34, 0.0 }
 0x481   :  { %v1378_v40 = vmax.f32 %v1356_v37, 0.0 }
 0x483   :  { %3601 = vmatprep.mubr.f32.mxu1 %v1378_v40 }
 0x484   :  { %3602 = vmatmul.mubr.f32.gmra.mrb[62].mxu1 %v1379_v39 }
 0x485   :  { %3748 = vmatprep.mubr.f32.mxu1 %v2021_v8 }
 0x4a1   :  { %v3694_v0 = vpop.f32.mrb[64].mxu0 }
 0x4a2   :  { %v1791_v44 = vpop.f32.mrb[65].mxu0  ;;  %v1878_v14 = vadd.f32 %v3694_v0, %v2858_v10 }
 0x4a3   :  { %v1877_v17 = vadd.f32 %v2858_v10, %v1791_v44 }
 0x4a4   :  { %v1894_v21 = vsub.f32 0.0, %v1878_v14 }
 0x4a5   :  { %v3697_v45 = vpop.f32.mrb[66].mxu0  ;;  %v1893_v3 = vsub.f32 0.0, %v1877_v17 }
 0x4a6   :  { %v1801_v47 = vpop.f32.mrb[67].mxu0  ;;  %v1880_v25 = vadd.f32 %v3697_v45, %v2858_v10  ;;  %v1911_v50 = vmul.f32 1.442695, %v1894_v21 }
 0x4a7   :  { %v1879_v13 = vadd.f32 %v2858_v10, %v1801_v47  ;;  %v1909_v34 = vmul.f32 1.442695, %v1893_v3 }
 0x4a8   :  { %v1896_v30 = vsub.f32 0.0, %v1880_v25  ;;  %4501 = vpow2.f32 %v1911_v50 }
 0x4a9   :  { %v3700_v49 = vpop.f32.mrb[68].mxu0  ;;  %v1895_v15 = vsub.f32 0.0, %v1879_v13  ;;  %4503 = vpow2.f32 %v1909_v34 }
 0x4aa   :  { %v1811_v56 = vpop.f32.mrb[69].mxu0  ;;  %v1882_v24 = vadd.f32 %v3700_v49, %v2858_v10  ;;  %v1915_v40 = vmul.f32 1.442695, %v1896_v30 }
 0x4ab   :  { %v1881_v37 = vadd.f32 %v2858_v10, %v1811_v56  ;;  %v1913_v11 = vmul.f32 1.442695, %v1895_v15 }
 0x4ac   :  { %v1898_v39 = vsub.f32 0.0, %v1882_v24  ;;  %4505 = vpow2.f32 %v1915_v40 }
 0x4ad   :  { %v3703_v52 = vpop.f32.mrb[70].mxu0  ;;  %v1897_v32 = vsub.f32 0.0, %v1881_v37  ;;  %4507 = vpow2.f32 %v1913_v11 }
 0x4ae   :  { %v1821_v54 = vpop.f32.mrb[71].mxu0  ;;  %v1884_v8 = vadd.f32 %v3703_v52, %v2858_v10  ;;  %v1919_v0 = vmul.f32 1.442695, %v1898_v39 }
 0x4af   :  { %v1883_v26 = vadd.f32 %v2858_v10, %v1821_v54  ;;  %v1917_v47 = vmul.f32 1.442695, %v1897_v32 }
 0x4b0   :  { %v1900_v44 = vsub.f32 0.0, %v1884_v8  ;;  %4509 = vpow2.f32 %v1919_v0 }
 0x4b1   :  { %v3706_v42 = vpop.f32.mrb[72].mxu0  ;;  %v1899_v14 = vsub.f32 0.0, %v1883_v26  ;;  %4511 = vpow2.f32 %v1917_v47 }
 0x4b2   :  { %v1831_v19 = vpop.f32.mrb[73].mxu0  ;;  %v1886_v45 = vadd.f32 %v3706_v42, %v2858_v10  ;;  %v1923_v49 = vmul.f32 1.442695, %v1900_v44  ;;  %v4502_v21 = vpop.eup %4501 }
 0x4b3   :  { %v1885_v17 = vadd.f32 %v2858_v10, %v1831_v19  ;;  %v1921_v3 = vmul.f32 1.442695, %v1899_v14  ;;  %v4504_v50 = vpop.eup %4503  ;;  %v1942_v54 = vadd.f32 1.0, %v4502_v21 }
 0x4b4   :  { %v1902_v56 = vsub.f32 0.0, %v1886_v45  ;;  %4513 = vpow2.f32 %v1923_v49  ;;  %v1941_v19 = vadd.f32 1.0, %v4504_v50 }
 0x4b5   :  { %v3709_v55 = vpop.f32.mrb[74].mxu0  ;;  %v1901_v52 = vsub.f32 0.0, %v1885_v17  ;;  %4515 = vpow2.f32 %v1921_v3 }
 0x4b6   :  { %v1841_v61 = vpop.f32.mrb[75].mxu0  ;;  %v1888_v25 = vadd.f32 %v3709_v55, %v2858_v10  ;;  %v4506_v30 = vpop.eup %4505  ;;  %v1927_v24 = vmul.f32 1.442695, %v1902_v56  ;;  %4517 = vrcp.f32 %v1942_v54 }
 0x4b7   :  { %v1887_v13 = vadd.f32 %v2858_v10, %v1841_v61  ;;  %v1925_v11 = vmul.f32 1.442695, %v1901_v52  ;;  %v4508_v15 = vpop.eup %4507  ;;  %v1944_v37 = vadd.f32 1.0, %v4506_v30 }
 0x4b8   :  { %v1904_v34 = vsub.f32 0.0, %v1888_v25  ;;  %4519 = vpow2.f32 %v1927_v24 }
 0x4b9   :  { %v3712_v59 = vpop.f32.mrb[76].mxu0  ;;  %v1903_v26 = vsub.f32 0.0, %v1887_v13  ;;  %4521 = vpow2.f32 %v1925_v11 }
 0x4ba   :  { %v1851_v63 = vpop.f32.mrb[77].mxu0  ;;  %v1890_v42 = vadd.f32 %v3712_v59, %v2858_v10  ;;  %v4510_v55 = vpop.eup %4509  ;;  %v1931_v40 = vmul.f32 1.442695, %v1904_v34  ;;  %4523 = vrcp.f32 %v1941_v19  ;;  %v1943_v59 = vadd.f32 1.0, %v4508_v15 }
 0x4bb   :  { %v1889_v32 = vadd.f32 %v2858_v10, %v1851_v63  ;;  %v1929_v8 = vmul.f32 1.442695, %v1903_v26  ;;  %v4512_v45 = vpop.eup %4511  ;;  %4525 = vrcp.f32 %v1944_v37  ;;  %v1946_v47 = vadd.f32 1.0, %v4510_v55 }
 0x4bc   :  { %v1906_v39 = vsub.f32 0.0, %v1890_v42  ;;  %4527 = vpow2.f32 %v1931_v40  ;;  %v1945_v56 = vadd.f32 1.0, %v4512_v45 }
 0x4bd   :  { %v3715_v2 = vpop.f32.mrb[78].mxu0  ;;  %v1905_v0 = vsub.f32 0.0, %v1889_v32  ;;  %4529 = vpow2.f32 %v1929_v8 }
 0x4be   :  { %v5647_v5 = vpop.f32.mrb[79].mxu0  ;;  %v1892_v61 = vadd.f32 %v3715_v2, %v2858_v10  ;;  %v4514_v63 = vpop.eup %4513  ;;  %v1935_v14 = vmul.f32 1.442695, %v1906_v39  ;;  %v5656_v2 = vld [vmem:[%s5807_s13] ss:$0 sm:$0xff]  ;;  %4531 = vrcp.f32 %v1943_v59 }
 0x4bf   :  { %v1891_v44 = vadd.f32 %v2858_v10, %v5647_v5  ;;  %v1933_v49 = vmul.f32 1.442695, %v1905_v0  ;;  %v4516_v5 = vpop.eup %4515  ;;  %4533 = vrcp.f32 %v1946_v47  ;;  %v1948_v10 = vadd.f32 1.0, %v4514_v63 }
 0x4c0   :  { %v1908_v17 = vsub.f32 0.0, %v1892_v61  ;;  %4535 = vpow2.f32 %v1935_v14  ;;  %v4518_v50 = vpop.eup %4517  ;;  %v1947_v34 = vadd.f32 1.0, %v4516_v5 }
 0x4c1   :  { %v1907_v21 = vsub.f32 0.0, %v1891_v44  ;;  %4537 = vpow2.f32 %v1933_v49 }
 0x4c2   :  { %v1939_v3 = vmul.f32 1.442695, %v1908_v17  ;;  %v4520_v24 = vpop.eup %4519  ;;  %4539 = vrcp.f32 %v1945_v56 }
 0x4c3   :  { %v1937_v54 = vmul.f32 1.442695, %v1907_v21  ;;  %v4522_v11 = vpop.eup %4521  ;;  %4541 = vrcp.f32 %v1948_v10  ;;  %v1950_v39 = vadd.f32 1.0, %v4520_v24 }
 0x4c4   :  { %v4524_v19 = vpop.eup %4523  ;;  %4543 = vpow2.f32 %v1939_v3 }
 0x4c5   :  { %v4526_v40 = vpop.eup %4525  ;;  %4545 = vpow2.f32 %v1937_v54 }
 0x4c6   :  { %v4528_v0 = vpop.eup %4527  ;;  %4547 = vrcp.f32 %v1947_v34 }
 0x4c7   :  { %v4530_v59 = vpop.eup %4529  ;;  %4549 = vrcp.f32 %v1950_v39  ;;  %v1952_v56 = vadd.f32 1.0, %v4528_v0 }
 0x4c8   :  { %v4532_v63 = vpop.eup %4531 }
 0x4c9   :  { %v4534_v21 = vpop.eup %4533 }
 0x53b   :  { %v3582_v25 = vpop.f32.mrb[48].mxu1 }
 0x53c   :  { %v1475_v52 = vadd.f32 %v3582_v25, %v5656_v2  ;;  %v1469_v13 = vpop.f32.mrb[49].mxu1  ;;  %v4536_v25 = vpop.eup %4535 }
 0x53d   :  { %v1470_v30 = vadd.f32 %v5656_v2, %v1469_v13 }
 0x53e   :  { %v1990_v42 = vadd.f32 %v5577_v23, %v1475_v52  ;;  %v1949_v23 = vadd.f32 1.0, %v4522_v11  ;;  %v1954_v11 = vadd.f32 1.0, %v4536_v25 }
 0x53f   :  { %v1989_v26 = vadd.f32 %v1470_v30, %v5581_v33  ;;  %v3585_v32 = vpop.f32.mrb[50].mxu1 }
 0x540   :  { %v2006_v15 = vmul.f32 %v4518_v50, %v1990_v42  ;;  %v1485_v37 = vadd.f32 %v3585_v32, %v5656_v2  ;;  %v1479_v55 = vpop.f32.mrb[51].mxu1  ;;  %4551 = vrcp.f32 %v1949_v23 }
 0x541   :  { %v2005_v61 = vmul.f32 %v4524_v19, %v1989_v26  ;;  %v1480_v8 = vadd.f32 %v5656_v2, %v1479_v55  ;;  %4553 = vrcp.f32 %v1952_v56 }
 0x542   :  { %v1992_v44 = vadd.f32 %v5583_v36, %v1485_v37  ;;  %v1951_v36 = vadd.f32 1.0, %v4530_v59 }
 0x543   :  { %v1991_v33 = vadd.f32 %v1480_v8, %v5585_v38  ;;  %v3588_v45 = vpop.f32.mrb[52].mxu1  ;;  %v4277_v47 = vpack.c.bf16 %v2006_v15, %v2005_v61  ;;  %v4538_v38 = vpop.eup %4537 }
 0x544   :  { %v2008_v14 = vmul.f32 %v4526_v40, %v1992_v44  ;;  %v1495_v17 = vadd.f32 %v3588_v45, %v5656_v2  ;;  %v1489_v49 = vpop.f32.mrb[53].mxu1  ;;  %v4540_v54 = vpop.eup %4539  ;;  %4555 = vrcp.f32 %v1951_v36 }
 0x545   :  { %v2007_v5 = vmul.f32 %v4532_v63, %v1991_v33  ;;  %v1490_v10 = vadd.f32 %v5656_v2, %v1489_v49  ;;  %4278 = vmatprep.subr.bf16.mxu1 %v4277_v47  ;;  %v4542_v42 = vpop.eup %4541  ;;  %4557 = vrcp.f32 %v1954_v11 }
 0x546   :  { %v1994_v3 = vadd.f32 %v5587_v41, %v1495_v17  ;;  %4280 = vmatpush3.bf16.msra.mxu1 %v4277_v47  ;;  %v4544_v19 = vpop.eup %4543  ;;  %v1953_v41 = vadd.f32 1.0, %v4538_v38 }
 0x547   :  { %v1993_v52 = vadd.f32 %v1490_v10, %v5589_v43  ;;  %v3591_v13 = vpop.f32.mrb[54].mxu1  ;;  %v4281_v50 = vpack.c.bf16 %v2008_v14, %v2007_v5  ;;  %v4546_v43 = vpop.eup %4545  ;;  %v1956_v23 = vadd.f32 1.0, %v4544_v19 }
 0x548   :  { %v2010_v30 = vmul.f32 %v4534_v21, %v1994_v3  ;;  %v1505_v24 = vadd.f32 %v3591_v13, %v5656_v2  ;;  %v1499_v34 = vpop.f32.mrb[55].mxu1  ;;  %v4548_v39 = vpop.eup %4547  ;;  %4559 = vrcp.f32 %v1953_v41  ;;  %v1955_v33 = vadd.f32 1.0, %v4546_v43 }
 0x549   :  { %v2009_v26 = vmul.f32 %v4540_v54, %v1993_v52  ;;  %v1500_v32 = vadd.f32 %v5656_v2, %v1499_v34  ;;  %4282 = vmatprep.subr.bf16.mxu1 %v4281_v50  ;;  %v4550_v45 = vpop.eup %4549  ;;  %4561 = vrcp.f32 %v1956_v23  ;;  %v2216_v23 = vld [vmem:[#allocation22 + $0x10] sm:$0xff] }
 0x54a   :  { %v1996_v15 = vadd.f32 %v5591_v46, %v1505_v24  ;;  %4284 = vmatpush3.bf16.msra.mxu1 %v4281_v50  ;;  %v4552_v14 = vpop.eup %4551  ;;  %4563 = vrcp.f32 %v1955_v33  ;;  %v2218_v33 = vld [vmem:[#allocation22 + $0x20] sm:$0xff] }
 0x54b   :  { %v1995_v37 = vadd.f32 %v1500_v32, %v5593_v48  ;;  %v3594_v55 = vpop.f32.mrb[56].mxu1  ;;  %v4285_v40 = vpack.c.bf16 %v2010_v30, %v2009_v26 }
 0x54c   :  { %v2012_v61 = vmul.f32 %v4542_v42, %v1996_v15  ;;  %v1515_v8 = vadd.f32 %v3594_v55, %v5656_v2  ;;  %v1509_v0 = vpop.f32.mrb[57].mxu1 }
 0x54d   :  { %v2011_v44 = vmul.f32 %v4548_v39, %v1995_v37  ;;  %v1510_v59 = vadd.f32 %v5656_v2, %v1509_v0  ;;  %4286 = vmatprep.subr.bf16.mxu1 %v4285_v40  ;;  %v2215_v39 = vld [vmem:[#allocation22 + $0x8] sm:$0xff] }
 0x54e   :  { %v1998_v46 = vadd.f32 %v5595_v51, %v1515_v8  ;;  %4288 = vmatpush3.bf16.msra.mxu1 %v4285_v40  ;;  %v4554_v51 = vpop.eup %4553  ;;  %v2214_v40 = vld [vmem:[#allocation22] sm:$0xff] }
 0x54f   :  { %v1997_v48 = vadd.f32 %v1510_v59, %v5597_v53  ;;  %v3597_v47 = vpop.f32.mrb[58].mxu1  ;;  %v4289_v63 = vpack.c.bf16 %v2012_v61, %v2011_v44  ;;  %v4556_v3 = vpop.eup %4555  ;;  %v4309_v0 = vpack.c.bf16 %v2215_v39, %v2214_v40  ;;  %v2217_v44 = vld [vmem:[#allocation22 + $0x18] sm:$0xff]  ;;  %v2202_v39 = vld [vmem:[#allocation20 + $0x20] sm:$0xff] }
 0x550   :  { %v2014_v17 = vmul.f32 %v4550_v45, %v1998_v46  ;;  %v1525_v49 = vadd.f32 %v3597_v47, %v5656_v2  ;;  %v1519_v21 = vpop.f32.mrb[59].mxu1  ;;  %v4558_v24 = vpop.eup %4557  ;;  %v4313_v59 = vpack.c.bf16 %v2217_v44, %v2216_v23  ;;  %v2024_v46 = vld [vmem:[#allocation8 + $0x18] sm:$0xff]  ;;  %v2025_v45 = vld [vmem:[#allocation8 + $0x20] sm:$0xff]  ;;  %v2220_v47 = vld [vmem:[#allocation22 + $0x30] sm:$0xff] }
 0x551   :  { %v2013_v56 = vmul.f32 %v4552_v14, %v1997_v48  ;;  %v1520_v5 = vadd.f32 %v5656_v2, %v1519_v21  ;;  %4290 = vmatprep.subr.bf16.mxu1 %v4289_v63  ;;  %v2026_v14 = vld [vmem:[#allocation8 + $0x28] sm:$0xff]  ;;  %v2222_v21 = vld [vmem:[#allocation22 + $0x40] sm:$0xff] }
 0x552   :  { %v2000_v10 = vadd.f32 %v5599_v16, %v1525_v49  ;;  %4292 = vmatpush3.bf16.msra.mxu1 %v4289_v63  ;;  %v2221_v63 = vld [vmem:[#allocation22 + $0x38] sm:$0xff] }
 0x553   :  { %v1999_v25 = vadd.f32 %v1520_v5, %v5601_v20  ;;  %v3600_v53 = vpop.f32.mrb[60].mxu1  ;;  %v4293_v36 = vpack.c.bf16 %v2014_v17, %v2013_v56  ;;  %v4560_v20 = vpop.eup %4559  ;;  %v2027_v17 = vld [vmem:[#allocation8 + $0x30] sm:$0xff]  ;;  %v4321_v49 = vpack.c.bf16 %v2221_v63, %v2220_v47  ;;  %v2223_v56 = vld [vmem:[#allocation22 + $0x48] sm:$0xff]  ;;  %v2028_v5 = vld [vmem:[#allocation8 + $0x38] sm:$0xff] }
 0x554   :  { %v2016_v38 = vmul.f32 %v4554_v51, %v2000_v10  ;;  %v1535_v52 = vadd.f32 %v3600_v53, %v5656_v2  ;;  %v1529_v13 = vpop.f32.mrb[61].mxu1  ;;  %v4562_v43 = vpop.eup %4561  ;;  %v2029_v10 = vld [vmem:[#allocation8 + $0x40] sm:$0xff]  ;;  %v4325_v51 = vpack.c.bf16 %v2223_v56, %v2222_v21  ;;  %v2225_v53 = vld [vmem:[#allocation22 + $0x58] sm:$0xff]  ;;  %v2207_v63 = vld [vmem:[#allocation20 + $0x48] sm:$0xff] }
 0x555   :  { %v2015_v50 = vmul.f32 %v4556_v3, %v1999_v25  ;;  %v1530_v54 = vadd.f32 %v5656_v2, %v1529_v13  ;;  %4294 = vmatprep.subr.bf16.mxu1 %v4293_v36  ;;  %v4564_v55 = vpop.eup %4563  ;;  %v2224_v25 = vld [vmem:[#allocation22 + $0x50] sm:$0xff]  ;;  %v2227_v13 = vld [vmem:[#allocation22 + $0x68] sm:$0xff]  ;;  %v2206_v47 = vld [vmem:[#allocation20 + $0x40] sm:$0xff] }
 0x556   :  { %v2002_v30 = vadd.f32 %v5603_v27, %v1535_v52  ;;  %4296 = vmatpush3.bf16.msra.mxu1 %v4293_v36  ;;  %v2030_v36 = vld [vmem:[#allocation8 + $0x48] sm:$0xff]  ;;  %v2031_v3 = vld [vmem:[#allocation8 + $0x50] sm:$0xff]  ;;  %v2226_v52 = vld [vmem:[#allocation22 + $0x60] sm:$0xff]  ;;  %v4357_v21 = vpack.c.bf16 %v2207_v63, %v2206_v47 }
 0x557   :  { %v2001_v16 = vadd.f32 %v1530_v54, %v5605_v28  ;;  %v3603_v34 = vpop.f32.mrb[62].mxu1  ;;  %v4297_v42 = vpack.c.bf16 %v2016_v38, %v2015_v50  ;;  %v4329_v38 = vpack.c.bf16 %v2225_v53, %v2224_v25  ;;  %v2032_v50 = vld [vmem:[#allocation8 + $0x58] sm:$0xff]  ;;  %v2033_v54 = vld [vmem:[#allocation8 + $0x60] sm:$0xff] }
 0x558   :  { %v2018_v11 = vmul.f32 %v4558_v24, %v2002_v30  ;;  %v1545_v26 = vadd.f32 %v3603_v34, %v5656_v2  ;;  %v1539_v32 = vpop.f32.mrb[63].mxu1  ;;  %v4333_v30 = vpack.c.bf16 %v2227_v13, %v2226_v52  ;;  %v2034_v24 = vld [vmem:[#allocation8 + $0x68] sm:$0xff]  ;;  %v2036_v34 = vld [vmem:[#allocation8 + $0x78] sm:$0xff] }
 0x559   :  { %v2017_v19 = vmul.f32 %v4560_v20, %v2001_v16  ;;  %v1540_v41 = vadd.f32 %v5656_v2, %v1539_v32  ;;  %4298 = vmatprep.subr.bf16.mxu1 %v4297_v42  ;;  %v2022_v2 = vld [vmem:[#allocation8 + $0x8] sm:$0xff]  ;;  %v2035_v16 = vld [vmem:[#allocation8 + $0x70] sm:$0xff]  ;;  %v2229_v20 = vld [vmem:[#allocation22 + $0x78] sm:$0xff] }
 0x55a   :  { %v2004_v15 = vadd.f32 %v5607_v31, %v1545_v26  ;;  %4300 = vmatpush3.bf16.msra.mxu1 %v4297_v42  ;;  %v2023_v31 = vld [vmem:[#allocation8 + $0x10] sm:$0xff]  ;;  %v2198_v26 = vld [vmem:[#allocation20] sm:$0xff]  ;;  %v2199_v32 = vld [vmem:[#allocation20 + $0x8] sm:$0xff] }
 0x55b   :  { %v2003_v27 = vadd.f32 %v1540_v41, %v5609_v35  ;;  %v4301_v37 = vpack.c.bf16 %v2018_v11, %v2017_v19  ;;  %v2219_v35 = vld [vmem:[#allocation22 + $0x28] sm:$0xff]  ;;  %v2228_v42 = vld [vmem:[#allocation22 + $0x70] sm:$0xff]  ;;  %v4341_v19 = vpack.c.bf16 %v2199_v32, %v2198_v26  ;;  %v5853_v47 = vld [vmem:[#allocation38_spill] sm:$0xff] }
 0x55c   :  { %v2020_v28 = vmul.f32 %v4562_v43, %v2004_v15  ;;  %v4317_v48 = vpack.c.bf16 %v2219_v35, %v2218_v33  ;;  %v4337_v11 = vpack.c.bf16 %v2229_v20, %v2228_v42  ;;  %v2200_v15 = vld [vmem:[#allocation20 + $0x10] sm:$0xff]  ;;  %v2201_v43 = vld [vmem:[#allocation20 + $0x18] sm:$0xff]  ;;  %v2211_v52 = vld [vmem:[#allocation20 + $0x68] sm:$0xff] }
 0x55d   :  { %v2019_v61 = vmul.f32 %v4564_v55, %v2003_v27  ;;  %4302 = vmatprep.subr.bf16.mxu1 %v4301_v37  ;;  %v2855_v42 = vld [vmem:[%s5851_s7] ss:$0 sm:$0xff] }
 0x55e   :  { %4304 = vmatpush3.bf16.msra.mxu1 %v4301_v37  ;;  %v673_v63 = vadd.f32 %v2855_v42, %v5853_v47 }
 0x55f   :  { %v4305_v8 = vpack.c.bf16 %v2020_v28, %v2019_v61  ;;  %v4345_v28 = vpack.c.bf16 %v2201_v43, %v2200_v15  ;;  %v2203_v61 = vld [vmem:[#allocation20 + $0x28] sm:$0xff] }
 0x560   :  { %v4349_v44 = vpack.c.bf16 %v2203_v61, %v2202_v39  ;;  %v623_v61 = vadd.f32 %v2855_v42, %v5533_v4  ;;  %v648_v4 = vadd.f32 %v5545_v6, %v2855_v42 }
 0x561   :  { %4306 = vmatprep.subr.bf16.mxu1 %v4305_v8 }
 0x562   :  { %4308 = vmatpush3.bf16.msra.mxu1 %v4305_v8 }
 0x563   :  { %4310 = vmatprep.subr.bf16.mxu1 %v4309_v0 }
 0x565   :  { %3749 = vmatmul.mubr.f32.vlgmr.msra.gmra.mrb[64].mxu1 %v2022_v2 }
 0x566   :  { %3751 = vmatprep.mubr.f32.mxu1 %v2023_v31  ;;  %4312 = vmatpush3.bf16.msra.mxu1 %v4309_v0  ;;  %v2204_v31 = vld [vmem:[#allocation20 + $0x30] sm:$0xff] }
 0x567   :  { %4314 = vmatprep.subr.bf16.mxu1 %v4313_v59 }
 0x569   :  { %3752 = vmatmul.mubr.f32.gmra.mrb[66].mxu1 %v2024_v46 }
 0x56a   :  { %3754 = vmatprep.mubr.f32.mxu1 %v2025_v45  ;;  %4316 = vmatpush3.bf16.msra.mxu1 %v4313_v59  ;;  %v2205_v59 = vld [vmem:[#allocation20 + $0x38] sm:$0xff] }
 0x56b   :  { %4318 = vmatprep.subr.bf16.mxu1 %v4317_v48  ;;  %v4353_v45 = vpack.c.bf16 %v2205_v59, %v2204_v31  ;;  %v643_v31 = vadd.f32 %v2855_v42, %v5549_v12  ;;  %v5852_v12 = vld [vmem:[#allocation36_spill] sm:$0xff] }
 0x56d   :  { %3755 = vmatmul.mubr.f32.gmra.mrb[68].mxu1 %v2026_v14  ;;  %v689_v59 = vmax.f32 %v643_v31, 0.0 }
 0x56e   :  { %3757 = vmatprep.mubr.f32.mxu1 %v2027_v17  ;;  %4320 = vmatpush3.bf16.msra.mxu1 %v4317_v48 }
 0x56f   :  { %4322 = vmatprep.subr.bf16.mxu1 %v4321_v49 }
 0x571   :  { %3758 = vmatmul.mubr.f32.gmra.mrb[70].mxu1 %v2028_v5  ;;  %v2208_v5 = vld [vmem:[#allocation20 + $0x50] sm:$0xff] }
 0x572   :  { %3760 = vmatprep.mubr.f32.mxu1 %v2029_v10  ;;  %4324 = vmatpush3.bf16.msra.mxu1 %v4321_v49  ;;  %v2209_v10 = vld [vmem:[#allocation20 + $0x58] sm:$0xff] }
 0x573   :  { %4326 = vmatprep.subr.bf16.mxu1 %v4325_v51 }
 0x575   :  { %3761 = vmatmul.mubr.f32.gmra.mrb[72].mxu1 %v2030_v36  ;;  %v4361_v36 = vpack.c.bf16 %v2209_v10, %v2208_v5 }
 0x576   :  { %3763 = vmatprep.mubr.f32.mxu1 %v2031_v3  ;;  %4328 = vmatpush3.bf16.msra.mxu1 %v4325_v51 }
 0x577   :  { %4330 = vmatprep.subr.bf16.mxu1 %v4329_v38 }
 0x579   :  { %3764 = vmatmul.mubr.f32.gmra.mrb[74].mxu1 %v2032_v50 }
 0x57a   :  { %3766 = vmatprep.mubr.f32.mxu1 %v2033_v54  ;;  %4332 = vmatpush3.bf16.msra.mxu1 %v4329_v38  ;;  %v2210_v38 = vld [vmem:[#allocation20 + $0x60] sm:$0xff] }
 0x57b   :  { %4334 = vmatprep.subr.bf16.mxu1 %v4333_v30 }
 0x57d   :  { %3767 = vmatmul.mubr.f32.gmra.mrb[76].mxu1 %v2034_v24 }
 0x57e   :  { %3769 = vmatprep.mubr.f32.mxu1 %v2035_v16  ;;  %4336 = vmatpush3.bf16.msra.mxu1 %v4333_v30  ;;  %v4365_v30 = vpack.c.bf16 %v2211_v52, %v2210_v38  ;;  %v2212_v16 = vld [vmem:[#allocation20 + $0x70] sm:$0xff] }
 0x57f   :  { %4338 = vmatprep.subr.bf16.mxu1 %v4337_v11 }
 0x581   :  { %3770 = vmatmul.mubr.f32.gmra.mrb[78].mxu1 %v2036_v34  ;;  %v2213_v34 = vld [vmem:[#allocation20 + $0x78] sm:$0xff] }
 0x582   :  { %4340 = vmatpush3.bf16.msra.mxu1 %v4337_v11  ;;  %v4369_v32 = vpack.c.bf16 %v2213_v34, %v2212_v16 }
 0x583   :  { %4342 = vmatprep.subr.bf16.mxu1 %v4341_v19 }
 0x638   :  { %v3750_v41 = vpop.f32.mrb[64].mxu1 }
 0x639   :  { %v2103_v27 = vpop.f32.mrb[65].mxu1  ;;  %v2183_v55 = vmax.f32 %v3750_v41, 0.0 }
 0x63a   :  { %v2182_v37 = vmax.f32 %v2103_v27, 0.0  ;;  %v608_v27 = vadd.f32 %v5515_v57, %v2855_v42  ;;  %v628_v57 = vadd.f32 %v5529_v1, %v2855_v42  ;;  %v690_v1 = vmax.f32 %v648_v4, 0.0 }
 0x63c   :  { %v3753_v40 = vpop.f32.mrb[66].mxu1  ;;  %3804 = vmatprep.mubr.f32.mxu1 %v2182_v37 }
 0x63d   :  { %v2113_v8 = vpop.f32.mrb[67].mxu1  ;;  %3805 = vmatmul.mubr.f32.vlgmr.msra.gmra.mrb[80].mxu1 %v2183_v55  ;;  %v2185_v23 = vmax.f32 %v3753_v40, 0.0  ;;  %v682_v40 = vmax.f32 %v608_v27, 0.0 }
 0x63e   :  { %v2184_v0 = vmax.f32 %v2113_v8, 0.0  ;;  %4344 = vmatpush3.bf16.msra.mxu1 %v4341_v19  ;;  %v603_v19 = vadd.f32 %v2855_v42, %v5517_v58  ;;  %v618_v58 = vadd.f32 %v5521_v60, %v2855_v42 }
 0x63f   :  { %4346 = vmatprep.subr.bf16.mxu1 %v4345_v28 }
 0x640   :  { %v3756_v2 = vpop.f32.mrb[68].mxu1  ;;  %3807 = vmatprep.mubr.f32.mxu1 %v2184_v0  ;;  %v681_v55 = vmax.f32 %v603_v19, 0.0  ;;  %v684_v8 = vmax.f32 %v618_v58, 0.0  ;;  %v685_v0 = vmax.f32 %v623_v61, 0.0 }
 0x641   :  { %v2123_v33 = vpop.f32.mrb[69].mxu1  ;;  %3808 = vmatmul.mubr.f32.gmra.mrb[82].mxu1 %v2185_v23  ;;  %v2187_v46 = vmax.f32 %v3756_v2, 0.0  ;;  %v633_v23 = vadd.f32 %v2855_v42, %v5541_v9  ;;  %v658_v9 = vadd.f32 %v5553_v18, %v2855_v42 }
 0x642   :  { %v2186_v35 = vmax.f32 %v2123_v33, 0.0  ;;  %4348 = vmatpush3.bf16.msra.mxu1 %v4345_v28  ;;  %v613_v28 = vadd.f32 %v2855_v42, %v5525_v62  ;;  %v686_v62 = vmax.f32 %v628_v57, 0.0  ;;  %v653_v33 = vadd.f32 %v2855_v42, %v5557_v22  ;;  %v5854_v22 = vld [vmem:[#allocation37_spill] sm:$0xff] }
 0x643   :  { %4350 = vmatprep.subr.bf16.mxu1 %v4349_v44  ;;  %v687_v2 = vmax.f32 %v633_v23, 0.0 }
 0x644   :  { %v3759_v48 = vpop.f32.mrb[70].mxu1  ;;  %3810 = vmatprep.mubr.f32.mxu1 %v2186_v35  ;;  %v683_v39 = vmax.f32 %v613_v28, 0.0  ;;  %v691_v35 = vmax.f32 %v653_v33, 0.0 }
 0x645   :  { %v2133_v14 = vpop.f32.mrb[71].mxu1  ;;  %3811 = vmatmul.mubr.f32.gmra.mrb[84].mxu1 %v2187_v46  ;;  %v2189_v49 = vmax.f32 %v3759_v48, 0.0  ;;  %v663_v46 = vadd.f32 %v2855_v42, %v5565_v29  ;;  %v2559_v29 = vlaneseq }
 0x646   :  { %v2188_v17 = vmax.f32 %v2133_v14, 0.0  ;;  %4352 = vmatpush3.bf16.msra.mxu1 %v4349_v44  ;;  %v638_v44 = vadd.f32 %v5537_v7, %v2855_v42  ;;  %v692_v7 = vmax.f32 %v658_v9, 0.0  ;;  %v678_v14 = vadd.f32 %v5854_v22, %v2855_v42 }
 0x647   :  { %4354 = vmatprep.subr.bf16.mxu1 %v4353_v45  ;;  %v693_v48 = vmax.f32 %v663_v46, 0.0  ;;  %v5720_v5 = vshrl.u32 %v2559_v29, 7 }
 0x648   :  { %v3762_v56 = vpop.f32.mrb[72].mxu1  ;;  %3813 = vmatprep.mubr.f32.mxu1 %v2188_v17  ;;  %v688_v60 = vmax.f32 %v638_v44, 0.0  ;;  %v695_v17 = vmax.f32 %v673_v63, 0.0  ;;  %v696_v18 = vmax.f32 %v678_v14, 0.0 }
 0x649   :  { %v2143_v51 = vpop.f32.mrb[73].mxu1  ;;  %3814 = vmatmul.mubr.f32.gmra.mrb[86].mxu1 %v2189_v49  ;;  %v2191_v53 = vmax.f32 %v3762_v56, 0.0  ;;  %v4957_v49 = vmov 0.0|0.0   ;;  %v5716_v56 = vld [vmem:[%s5856_s26] ss:$0 sm:$0xff] }
 0x64a   :  { %v2190_v25 = vmax.f32 %v2143_v51, 0.0  ;;  %4356 = vmatpush3.bf16.msra.mxu1 %v4353_v45  ;;  %v668_v45 = vadd.f32 %v5852_v12, %v2855_v42  ;;  %4373 = vmatprep.subr.bf16.mxu0 %v4957_v49  ;;  %vm2566_vm1 = vcmp.eq.s32.totalorder %v5720_v5, %v5716_v56  ;;  %v5731_v51 = vld [vmem:[%s5813_s19] ss:$0 sm:$0xff]  ;;  %v2653_v5 = vld [vmem:[#allocation23 + $0x48] sm:$0xff] }
 0x64b   :  { %4358 = vmatprep.subr.bf16.mxu1 %v4357_v21  ;;  %v2652_v56 = vld [vmem:[#allocation23 + $0x40] sm:$0xff] }
 0x64c   :  { %v3765_v3 = vpop.f32.mrb[74].mxu1  ;;  %3816 = vmatprep.mubr.f32.mxu1 %v2190_v25  ;;  %v694_v6 = vmax.f32 %v668_v45, 0.0 }
 0x64d   :  { %v2153_v13 = vpop.f32.mrb[75].mxu1  ;;  %3817 = vmatmul.mubr.f32.gmra.mrb[88].mxu1 %v2191_v53  ;;  %v2193_v54 = vmax.f32 %v3765_v3, 0.0 }
 0x64e   :  { %v2192_v50 = vmax.f32 %v2153_v13, 0.0  ;;  %4360 = vmatpush3.bf16.msra.mxu1 %v4357_v21  ;;  %v5855_v21 = vmov 0.0  }
 0x64f   :  { %4362 = vmatprep.subr.bf16.mxu1 %v4361_v36  ;;  %3916 = vmatprep.mubr.msk.f32.mxu0 %vm4958_vm0, %v5855_v21  ;;  %v2861_v10 = vsel %vm2566_vm1, 1.0, %v5855_v21 }
 0x650   :  { %v3768_v24 = vpop.f32.mrb[76].mxu1  ;;  %3819 = vmatprep.mubr.f32.mxu1 %v2192_v50  ;;  %2569 = vadd.xlane.f32.xlu0 %v2861_v10 }
 0x651   :  { %v2163_v20 = vpop.f32.mrb[77].mxu1  ;;  %3820 = vmatmul.mubr.f32.gmra.mrb[90].mxu1 %v2193_v54  ;;  %v2195_v26 = vmax.f32 %v3768_v24, 0.0 }
 0x652   :  { %v2194_v11 = vmax.f32 %v2163_v20, 0.0  ;;  %4364 = vmatpush3.bf16.msra.mxu1 %v4361_v36 }
 0x653   :  { %4366 = vmatprep.subr.bf16.mxu1 %v4365_v30 }
 0x654   :  { %v3771_v41 = vpop.f32.mrb[78].mxu1  ;;  %3822 = vmatprep.mubr.f32.mxu1 %v2194_v11 }
 0x655   :  { %v2173_v15 = vpop.f32.mrb[79].mxu1  ;;  %3823 = vmatmul.mubr.f32.gmra.mrb[92].mxu1 %v2195_v26  ;;  %v2197_v37 = vmax.f32 %v3771_v41, 0.0 }
 0x656   :  { %v2196_v43 = vmax.f32 %v2173_v15, 0.0  ;;  %4368 = vmatpush3.bf16.msra.mxu1 %v4365_v30 }
 0x657   :  { %4370 = vmatprep.subr.bf16.mxu1 %v4369_v32 }
 0x658   :  { %3825 = vmatprep.mubr.f32.mxu1 %v2196_v43 }
 0x659   :  { %3826 = vmatmul.mubr.f32.gmra.mrb[94].mxu1 %v2197_v37 }
 0x65a   :  { %4372 = vmatpush3.bf16.msra.mxu1 %v4369_v32  ;;  %3860 = vmatprep.mubr.f32.mxu1 %v681_v55 }
 0x65b   :  { %4421 = vmatprep.subr.bf16.mxu1 %v4957_v49 }
 0x65d   :  { %3861 = vmatmul.mubr.f32.vlgmr.msra.gmra.mrb[80].mxu1 %v682_v40 }
 0x65e   :  { %3863 = vmatprep.mubr.f32.mxu1 %v683_v39 }
 0x661   :  { %3864 = vmatmul.mubr.f32.gmra.mrb[82].mxu1 %v684_v8 }
 0x662   :  { %3866 = vmatprep.mubr.f32.mxu1 %v685_v0 }
 0x665   :  { %3867 = vmatmul.mubr.f32.gmra.mrb[84].mxu1 %v686_v62 }
 0x666   :  { %3869 = vmatprep.mubr.f32.mxu1 %v687_v2 }
 0x669   :  { %3870 = vmatmul.mubr.f32.gmra.mrb[86].mxu1 %v688_v60 }
 0x66a   :  { %3872 = vmatprep.mubr.f32.mxu1 %v689_v59 }
 0x66d   :  { %3873 = vmatmul.mubr.f32.gmra.mrb[88].mxu1 %v690_v1 }
 0x66e   :  { %3875 = vmatprep.mubr.f32.mxu1 %v691_v35 }
 0x671   :  { %3876 = vmatmul.mubr.f32.gmra.mrb[90].mxu1 %v692_v7 }
 0x672   :  { %3878 = vmatprep.mubr.f32.mxu1 %v693_v48 }
 0x675   :  { %3879 = vmatmul.mubr.f32.gmra.mrb[92].mxu1 %v694_v6 }
 0x676   :  { %3881 = vmatprep.mubr.f32.mxu1 %v695_v17  ;;  %v2644_v17 = vld [vmem:[#allocation23] sm:$0xff] }
 0x679   :  { %3882 = vmatmul.mubr.f32.gmra.mrb[94].mxu1 %v696_v18  ;;  %v2645_v18 = vld [vmem:[#allocation23 + $0x8] sm:$0xff] }
 0x67a   :  { %3986 = vmatprep.mubr.msk.f32.mxu1 %vm4958_vm0, %v5855_v21  ;;  %v4398_v10 = vpack.c.bf16 %v2645_v18, %v2644_v17 }
 0x730   :  { %v3862_v25 = vpop.f32.mrb[80].mxu1 }
 0x731   :  { %v2528_v53 = vadd.f32 %v3862_v25, %v5731_v51  ;;  %v2441_v36 = vpop.f32.mrb[81].mxu1  ;;  %v2646_v25 = vld [vmem:[#allocation23 + $0x10] sm:$0xff] }
 0x732   :  { %v2527_v3 = vadd.f32 %v5731_v51, %v2441_v36  ;;  %v4959_v36 = vmov 1.0  }
 0x733   :  { %v2544_v38 = vmax.f32 %v2528_v53, 0.0  ;;  %v2647_v53 = vld [vmem:[#allocation23 + $0x18] sm:$0xff] }
 0x734   :  { %v2543_v52 = vmax.f32 %v2527_v3, 0.0  ;;  %v3865_v13 = vpop.f32.mrb[82].mxu1  ;;  %v2648_v3 = vld [vmem:[#allocation23 + $0x20] sm:$0xff] }
 0x735   :  { %v2530_v50 = vadd.f32 %v3865_v13, %v5731_v51  ;;  %v2451_v54 = vpop.f32.mrb[83].mxu1  ;;  %v2650_v13 = vld [vmem:[#allocation23 + $0x30] sm:$0xff] }
 0x736   :  { %v4374_v30 = vpack.c.bf16 %v2544_v38, %v2543_v52  ;;  %v2529_v24 = vadd.f32 %v5731_v51, %v2451_v54  ;;  %v2649_v38 = vld [vmem:[#allocation23 + $0x28] sm:$0xff] }
 0x737   :  { %v2546_v16 = vmax.f32 %v2530_v50, 0.0  ;;  %v4404_v52 = vpack.c.bf16 %v2649_v38, %v2648_v3  ;;  %v2651_v50 = vld [vmem:[#allocation23 + $0x38] sm:$0xff] }
 0x738   :  { %v2545_v34 = vmax.f32 %v2529_v24, 0.0  ;;  %v3868_v42 = vpop.f32.mrb[84].mxu1  ;;  %4375 = vmatpush3.bf16.msra.mxu0 %v4374_v30  ;;  %v4407_v54 = vpack.c.bf16 %v2651_v50, %v2650_v13  ;;  %v4410_v30 = vpack.c.bf16 %v2653_v5, %v2652_v56  ;;  %v2655_v24 = vld [vmem:[#allocation23 + $0x58] sm:$0xff] }
 0x739   :  { %v2532_v20 = vadd.f32 %v3868_v42, %v5731_v51  ;;  %v2461_v11 = vpop.f32.mrb[85].mxu1  ;;  %4376 = vmatprep.subr.bf16.mxu0 %v4957_v49  ;;  %v2657_v42 = vld [vmem:[#allocation23 + $0x68] sm:$0xff] }
 0x73a   :  { %v4377_v26 = vpack.c.bf16 %v2546_v16, %v2545_v34  ;;  %v2531_v32 = vadd.f32 %v5731_v51, %v2461_v11  ;;  %v2656_v34 = vld [vmem:[#allocation23 + $0x60] sm:$0xff]  ;;  %v2658_v11 = vld [vmem:[#allocation23 + $0x70] sm:$0xff] }
 0x73b   :  { %v2548_v19 = vmax.f32 %v2532_v20, 0.0  ;;  %v4416_v20 = vpack.c.bf16 %v2657_v42, %v2656_v34 }
 0x73c   :  { %v2547_v41 = vmax.f32 %v2531_v32, 0.0  ;;  %v3871_v15 = vpop.f32.mrb[86].mxu1  ;;  %4378 = vmatpush3.bf16.msra.mxu0 %v4377_v26  ;;  %v2659_v26 = vld [vmem:[#allocation23 + $0x78] sm:$0xff] }
 0x73d   :  { %v2534_v43 = vadd.f32 %v3871_v15, %v5731_v51  ;;  %v2471_v27 = vpop.f32.mrb[87].mxu1  ;;  %4379 = vmatprep.subr.bf16.mxu0 %v4957_v49  ;;  %v4419_v32 = vpack.c.bf16 %v2659_v26, %v2658_v11  ;;  %v2740_v15 = vld [vmem:[#allocation25 + $0x10] sm:$0xff] }
 0x73e   :  { %v4380_v37 = vpack.c.bf16 %v2548_v19, %v2547_v41  ;;  %v2533_v55 = vadd.f32 %v5731_v51, %v2471_v27  ;;  %v2738_v19 = vld [vmem:[#allocation25] sm:$0xff]  ;;  %v2739_v41 = vld [vmem:[#allocation25 + $0x8] sm:$0xff]  ;;  %v2741_v27 = vld [vmem:[#allocation25 + $0x18] sm:$0xff] }
 0x73f   :  { %v2550_v28 = vmax.f32 %v2534_v43, 0.0  ;;  %v4422_v43 = vpack.c.bf16 %v2739_v41, %v2738_v19 }
 0x740   :  { %v2549_v40 = vmax.f32 %v2533_v55, 0.0  ;;  %v3874_v58 = vpop.f32.mrb[88].mxu1  ;;  %4381 = vmatpush3.bf16.msra.mxu0 %v4380_v37  ;;  %v4425_v37 = vpack.c.bf16 %v2741_v27, %v2740_v15  ;;  %v2742_v55 = vld [vmem:[#allocation25 + $0x20] sm:$0xff] }
 0x741   :  { %v2536_v39 = vadd.f32 %v3874_v58, %v5731_v51  ;;  %v2481_v61 = vpop.f32.mrb[89].mxu1  ;;  %4382 = vmatprep.subr.bf16.mxu0 %v4957_v49  ;;  %4423 = vmatpush3.bf16.msra.mxu1 %v4422_v43  ;;  %v2744_v58 = vld [vmem:[#allocation25 + $0x30] sm:$0xff] }
 0x742   :  { %v4383_v8 = vpack.c.bf16 %v2550_v28, %v2549_v40  ;;  %v2535_v57 = vadd.f32 %v5731_v51, %v2481_v61  ;;  %4424 = vmatprep.subr.bf16.mxu1 %v4957_v49  ;;  %v2743_v28 = vld [vmem:[#allocation25 + $0x28] sm:$0xff] }
 0x743   :  { %v2552_v0 = vmax.f32 %v2536_v39, 0.0  ;;  %v4428_v40 = vpack.c.bf16 %v2743_v28, %v2742_v55  ;;  %v2745_v39 = vld [vmem:[#allocation25 + $0x38] sm:$0xff] }
 0x744   :  { %v2551_v23 = vmax.f32 %v2535_v57, 0.0  ;;  %v3877_v62 = vpop.f32.mrb[90].mxu1  ;;  %4384 = vmatpush3.bf16.msra.mxu0 %v4383_v8  ;;  %v4431_v61 = vpack.c.bf16 %v2745_v39, %v2744_v58  ;;  %v2746_v8 = vld [vmem:[#allocation25 + $0x40] sm:$0xff]  ;;  %v2747_v57 = vld [vmem:[#allocation25 + $0x48] sm:$0xff] }
 0x745   :  { %v2538_v44 = vadd.f32 %v3877_v62, %v5731_v51  ;;  %v2491_v2 = vpop.f32.mrb[91].mxu1  ;;  %4385 = vmatprep.subr.bf16.mxu0 %v4957_v49  ;;  %4426 = vmatpush3.bf16.msra.mxu1 %v4425_v37  ;;  %v2749_v62 = vld [vmem:[#allocation25 + $0x58] sm:$0xff] }
 0x746   :  { %v4386_v31 = vpack.c.bf16 %v2552_v0, %v2551_v23  ;;  %v2537_v60 = vadd.f32 %v5731_v51, %v2491_v2  ;;  %4427 = vmatprep.subr.bf16.mxu1 %v4957_v49  ;;  %v4434_v0 = vpack.c.bf16 %v2747_v57, %v2746_v8  ;;  %v2748_v23 = vld [vmem:[#allocation25 + $0x50] sm:$0xff]  ;;  %v2750_v2 = vld [vmem:[#allocation25 + $0x60] sm:$0xff] }
 0x747   :  { %v2554_v4 = vmax.f32 %v2538_v44, 0.0  ;;  %v4437_v44 = vpack.c.bf16 %v2749_v62, %v2748_v23 }
 0x748   :  { %v2553_v59 = vmax.f32 %v2537_v60, 0.0  ;;  %v3880_v33 = vpop.f32.mrb[92].mxu1  ;;  %4387 = vmatpush3.bf16.msra.mxu0 %v4386_v31  ;;  %v2751_v31 = vld [vmem:[#allocation25 + $0x68] sm:$0xff] }
 0x749   :  { %v2540_v1 = vadd.f32 %v3880_v33, %v5731_v51  ;;  %v2501_v9 = vpop.f32.mrb[93].mxu1  ;;  %4388 = vmatprep.subr.bf16.mxu0 %v4957_v49  ;;  %4429 = vmatpush3.bf16.msra.mxu1 %v4428_v40  ;;  %v4440_v60 = vpack.c.bf16 %v2751_v31, %v2750_v2 }
 0x74a   :  { %v4389_v35 = vpack.c.bf16 %v2554_v4, %v2553_v59  ;;  %v2539_v46 = vadd.f32 %v5731_v51, %v2501_v9  ;;  %4430 = vmatprep.subr.bf16.mxu1 %v4957_v49  ;;  %v2570_v4 = vpop.xlane.xlu0 %2569 }
 0x74b   :  { %v2556_v7 = vmax.f32 %v2540_v1, 0.0  ;;  %v2571_v59 = vmax.f32 %v2570_v4, 1.0 }
 0x74c   :  { %v2555_v12 = vmax.f32 %v2539_v46, 0.0  ;;  %v3883_v45 = vpop.f32.mrb[94].mxu1  ;;  %4390 = vmatpush3.bf16.msra.mxu0 %v4389_v35  ;;  %v2752_v46 = vld [vmem:[#allocation25 + $0x70] sm:$0xff] }
 0x74d   :  { %v2542_v48 = vadd.f32 %v3883_v45, %v5731_v51  ;;  %v2511_v47 = vpop.f32.mrb[95].mxu1  ;;  %4391 = vmatprep.subr.bf16.mxu0 %v4957_v49  ;;  %4432 = vmatpush3.bf16.msra.mxu1 %v4431_v61  ;;  %4565 = vrcp.f32 %v2571_v59  ;;  %v2863_v45 = vld [vmem:[%s5857_s15] ss:$0 sm:$0xff] }
 0x74e   :  { %v4392_v63 = vpack.c.bf16 %v2556_v7, %v2555_v12  ;;  %v2541_v6 = vadd.f32 %v5731_v51, %v2511_v47  ;;  %v4401_v51 = vpack.c.bf16 %v2647_v53, %v2646_v25  ;;  %4433 = vmatprep.subr.bf16.mxu1 %v4957_v49  ;;  %v2753_v7 = vld [vmem:[#allocation25 + $0x78] sm:$0xff] }
 0x74f   :  { %v2558_v22 = vmax.f32 %v2542_v48, 0.0  ;;  %v4443_v12 = vpack.c.bf16 %v2753_v7, %v2752_v46 }
 0x750   :  { %v2557_v14 = vmax.f32 %v2541_v6, 0.0  ;;  %4393 = vmatpush3.bf16.msra.mxu0 %v4392_v63  ;;  %v2864_v6 = vld [vmem:[%s5858_s30] ss:$0 sm:$0xff] }
 0x751   :  { %4394 = vmatprep.subr.bf16.mxu0 %v4957_v49  ;;  %4435 = vmatpush3.bf16.msra.mxu1 %v4434_v0 }
 0x752   :  { %v4395_v29 = vpack.c.bf16 %v2558_v22, %v2557_v14  ;;  %4436 = vmatprep.subr.bf16.mxu1 %v4957_v49 }
 0x754   :  { %4396 = vmatpush3.bf16.msra.mxu0 %v4395_v29 }
 0x755   :  { %4397 = vmatprep.subr.bf16.mxu0 %v4957_v49  ;;  %4438 = vmatpush3.bf16.msra.mxu1 %v4437_v44 }
 0x756   :  { %4439 = vmatprep.subr.bf16.mxu1 %v4957_v49 }
 0x757   :  { %3917 = vmatmul.mubr.msk.f32.vlgmr.msra.gmra.mrb[80].mxu0 %vm2566_vm1, %v4959_v36  ;;  %v4566_v33 = vpop.eup %4565 }
 0x758   :  { %4399 = vmatpush3.bf16.msra.mxu0 %v4398_v10  ;;  %3951 = vmatprep.mubr.msk.f32.mxu0 %vm4958_vm0, %v5855_v21  ;;  %v2654_v21 = vld [vmem:[#allocation23 + $0x50] sm:$0xff] }
 0x759   :  { %4400 = vmatprep.subr.bf16.mxu0 %v4957_v49  ;;  %v4413_v16 = vpack.c.bf16 %v2655_v24, %v2654_v21  ;;  %4441 = vmatpush3.bf16.msra.mxu1 %v4440_v60 }
 0x75a   :  { %4442 = vmatprep.subr.bf16.mxu1 %v4957_v49 }
 0x75c   :  { %4402 = vmatpush3.bf16.msra.mxu0 %v4401_v51 }
 0x75d   :  { %4403 = vmatprep.subr.bf16.mxu0 %v4957_v49  ;;  %4444 = vmatpush3.bf16.msra.mxu1 %v4443_v12 }
 0x760   :  { %4405 = vmatpush3.bf16.msra.mxu0 %v4404_v52 }
 0x761   :  { %4406 = vmatprep.subr.bf16.mxu0 %v4957_v49 }
 0x764   :  { %4408 = vmatpush3.bf16.msra.mxu0 %v4407_v54 }
 0x765   :  { %4409 = vmatprep.subr.bf16.mxu0 %v4957_v49 }
 0x768   :  { %4411 = vmatpush3.bf16.msra.mxu0 %v4410_v30 }
 0x769   :  { %4412 = vmatprep.subr.bf16.mxu0 %v4957_v49 }
 0x76c   :  { %4414 = vmatpush3.bf16.msra.mxu0 %v4413_v16 }
 0x76d   :  { %4415 = vmatprep.subr.bf16.mxu0 %v4957_v49 }
 0x770   :  { %4417 = vmatpush3.bf16.msra.mxu0 %v4416_v20 }
 0x771   :  { %4418 = vmatprep.subr.bf16.mxu0 %v4957_v49 }
 0x774   :  { %4420 = vmatpush3.bf16.msra.mxu0 %v4419_v32 }
 0x82a   :  { %v2638_v1 = vpop.f32.mrb[80].mxu0 }
 0x82b   :  { %v2643_v9 = vmul.f32 %v4566_v33, %v2638_v1  ;;  %v3918_v35 = vpop.f32.mrb[81].mxu0 }
 0x82d   :  { %3952 = vmatmul.mubr.f32.vlgmr.msra.gmra.mrb[82].mxu0 %v2643_v9 }
 0x900   :  { %v2733_v48 = vpop.f32.mrb[82].mxu0 }
 0x901   :  { %v2734_v47 = vadd.f32 %v2863_v45, %v2733_v48  ;;  %v3953_v63 = vpop.f32.mrb[83].mxu0 }
 0x903   :  { %v2737_v49 = vmax.f32 %v2734_v47, 0.0 }
 0x905   :  { %3987 = vmatmul.mubr.f32.vlgmr.msra.gmra.mrb[96].mxu1 %v2737_v49 }
 0x9d8   :  { %v2827_v22 = vpop.f32.mrb[96].mxu1 }
 0x9d9   :  { %v2828_v14 = vadd.f32 %v2864_v6, %v2827_v22  ;;  %v3988_v17 = vpop.f32.mrb[97].mxu1 }
 0x9db   :  { %2831 = vst [vmem:[#allocation26] sm:$0xff] %v2828_v14 }
 0x9dc   :  { %4908 = shalt.err (!%p4905_p12)
}
 0x9dd   :  { %s5859_s12 = sld [smem:[#allocation50_spill]] }
 0x9e3   :  { %s4909_s25 = scalar_lea.hbm %s5859_s12, 128 }
 0x9e4   :  { %p4910_p13 = scmp.ne.s32.totalorder %s5859_s12, %s4909_s25  ;;  %p4913_p0 = scmp.lt.u32.totalorder %s4909_s25, %s5859_s12 }
 0x9e6   :  { %p4915_p1 = pnand %p4913_p0, %p4910_p13 }
 0x9e8   :  { %4918 = shalt.err (!%p4915_p1)
}
 0x9e9   :  { %2841 = dma.vmem_to_hbm [thread:$0]  %s2839_s23, 128, %s5859_s12, [#allocation4]  }
 0x9ea   :  { %4935 = dma.done.wait [#allocation4], 128  }
 0x9eb   :  { %4936 = vsyncadd [#allocation4], 4294967168 }
 0x9ec   :  { %2845 = vsyncpa [#allocation3], 1 }
 0x9ed   :  { %2846 = vsyncpa [#allocation6], 1 }
 0x9ee   :  { %2847 = vsyncpa [#allocation9], 1 }
 0x9ef   :  { %2848 = vsyncpa [#allocation12], 1 }
 0x9f0   :  { %2849 = vsyncpa [#allocation15], 1 }
 0x9f1   :  { %2850 = vsyncpa [#allocation18], 1 }
 0x9f2   :  { %2851 = vsyncpa [#allocation21], 1 }
 0x9f3   :  { %2852 = vsyncpa [#allocation24], 1 }
 0x9f4   :  { %2853 = vsyncpa [#allocation4], 1 }

</bundles_post_ra>
